<compile_context>
chip_gen: v5e
topology: v5e:2x2
jax: 0.10.0
libtpu: 0.0.40
codegen_flags: <defaults>
</compile_context>

<pallas_src>
import jax
import jax.numpy as jnp
from jax.experimental import pallas as pl
from jax.experimental.pallas import tpu as pltpu

# ----------------------------- config -----------------------------
HIDDEN = 32
NUM_HEADS = 4
HEAD_DIM = HIDDEN // NUM_HEADS
INTERMEDIATE = 4 * HIDDEN
NUM_LAYERS = 2
SEQ = 8
BATCH = 2
ROWS = BATCH * SEQ
EPS = 1e-6

# packed w_in column layout: [Wq|Wk|Wv (3D) | Wc (D) | W1 (4D)]
QKV_OFF = 0
C_OFF = 3 * HIDDEN
FF1_OFF = 4 * HIDDEN
W_IN_COLS = FF1_OFF + INTERMEDIATE


# --------------------------- kernel body ---------------------------
def _layernorm(x, g, b):
    mu = jnp.mean(x, axis=-1, keepdims=True)
    var = jnp.mean((x - mu) ** 2, axis=-1, keepdims=True)
    return (x - mu) * jax.lax.rsqrt(var + EPS) * g + b


def _quick_gelu(x):
    # QuickGLEU: x * sigmoid(1.702 * x)
    return x * jax.nn.sigmoid(1.702 * x)


def _split_heads(t):
    # (ROWS, D) -> (BATCH*NUM_HEADS, SEQ, HEAD_DIM); static slices only.
    blocks = [t[b * SEQ:(b + 1) * SEQ, h * HEAD_DIM:(h + 1) * HEAD_DIM]
              for b in range(BATCH) for h in range(NUM_HEADS)]
    return jnp.stack(blocks, axis=0)


def _merge_heads(o):
    # (BATCH*NUM_HEADS, SEQ, HEAD_DIM) -> (ROWS, D)
    rows = [jnp.concatenate([o[b * NUM_HEADS + h] for h in range(NUM_HEADS)],
                            axis=-1)
            for b in range(BATCH)]
    return jnp.concatenate(rows, axis=0)


def vit_encoder_kernel(x_ref, w_in_ref, w2_ref, bias_ref, out_ref):
    x = x_ref[...]                       # (ROWS, D) f32, stays in VMEM/vregs
    scale = 1.0 / (HEAD_DIM ** 0.5)

    for l in range(NUM_LAYERS):          # static unroll over the layer stack
        w_in = w_in_ref[l]               # (D, 3D + D + 4D)
        w_2 = w2_ref[l]                  # (4D, D)
        bias = bias_ref[l]               # (8, 128)

        w_qkv = w_in[:, QKV_OFF:C_OFF]           # (D, 3D)
        w_c = w_in[:, C_OFF:FF1_OFF]             # (D, D)
        w_1 = w_in[:, FF1_OFF:W_IN_COLS]         # (D, 4D)

        ln_pre_g = bias[0:1, :HIDDEN]
        ln_pre_b = bias[1:2, :HIDDEN]
        ln_post_g = bias[2:3, :HIDDEN]
        ln_post_b = bias[3:4, :HIDDEN]
        b_qkv = bias[4:5, :3 * HIDDEN]
        b_c = bias[5:6, :HIDDEN]
        b_1 = bias[6:7, :INTERMEDIATE]
        b_2 = bias[7:8, :HIDDEN]

        # ---------------- self-attention branch ----------------
        h = _layernorm(x, ln_pre_g, ln_pre_b)
        qkv = jnp.dot(h, w_qkv, preferred_element_type=jnp.float32) + b_qkv
        q = qkv[:, :HIDDEN] * scale      # fold 1/sqrt(head_dim) into q
        k = qkv[:, HIDDEN:2 * HIDDEN]
        v = qkv[:, 2 * HIDDEN:]

        qs = _split_heads(q)             # (B*H, S, Dh)
        ks = _split_heads(k)
        vs = _split_heads(v)

        s = jnp.einsum("bqd,bkd->bqk", qs, ks,
                       preferred_element_type=jnp.float32)   # (B*H, S, S)
        s = s - jnp.max(s, axis=-1, keepdims=True)
        p = jnp.exp(s)
        p = p * pl.reciprocal(jnp.sum(p, axis=-1, keepdims=True), approx=True)
        o = jnp.einsum("bqk,bkd->bqd", p, vs,
                       preferred_element_type=jnp.float32)   # (B*H, S, Dh)

        attn = _merge_heads(o)                                # (ROWS, D)
        attn = jnp.dot(attn, w_c, preferred_element_type=jnp.float32) + b_c
        # attn_dropout / out_dropout are p=0.0 -> identity
        x = x + attn

        # -------------------- MLP branch --------------------
        h2 = _layernorm(x, ln_post_g, ln_post_b)
        ff = jnp.dot(h2, w_1, preferred_element_type=jnp.float32) + b_1
        ff = _quick_gelu(ff)
        ff = jnp.dot(ff, w_2, preferred_element_type=jnp.float32) + b_2
        x = x + ff

    # TODO(synk): a lane-dense (rows, 128) output view would avoid masked
    # 32-of-128-lane stores; at D=32 with a single full-block write the effect
    # is negligible, so the natural (ROWS, D) layout is kept.
    out_ref[...] = x


# --------------------------- wrapper ---------------------------
@jax.jit
def vit_encoder(x, packed_params):
    """x: (B, S, D) f32. packed_params: (w_in, w2, bias) slabs (see pack_params)."""
    B, S, D = x.shape
    w_in, w2, bias = packed_params
    x2 = x.reshape(B * S, D)             # free XLA reshape outside the kernel

    vmem = pl.BlockSpec(memory_space=pltpu.MemorySpace.VMEM)
    out = pl.pallas_call(
        vit_encoder_kernel,
        out_shape=jax.ShapeDtypeStruct((B * S, D), jnp.float32),
        in_specs=[vmem, vmem, vmem, vmem],
        out_specs=vmem,
    )(x2, w_in, w2, bias)
    return out.reshape(B, S, D)


# ---------------------- parameter construction ----------------------
def init_layer_params(key):
    ks = jax.random.split(key, 8)
    scale = 0.02

    def lin(k, din, dout):
        kw, kb = jax.random.split(k)
        w = scale * jax.random.normal(kw, (din, dout), jnp.float32)
        b = scale * jax.random.normal(kb, (1, dout), jnp.float32)
        return w, b

    wq, bq = lin(ks[0], HIDDEN, HIDDEN)
    wk, bk = lin(ks[1], HIDDEN, HIDDEN)
    wv, bv = lin(ks[2], HIDDEN, HIDDEN)
    wc, bc = lin(ks[3], HIDDEN, HIDDEN)
    w1, b1 = lin(ks[4], HIDDEN, INTERMEDIATE)
    w2, b2 = lin(ks[5], INTERMEDIATE, HIDDEN)
    # slightly randomized LN affine params so packing is exercised
    lnpre_g = 1.0 + 0.1 * jax.random.normal(ks[6], (1, HIDDEN), jnp.float32)
    lnpre_b = 0.1 * jax.random.normal(ks[6], (1, HIDDEN), jnp.float32)
    lnpost_g = 1.0 + 0.1 * jax.random.normal(ks[7], (1, HIDDEN), jnp.float32)
    lnpost_b = 0.1 * jax.random.normal(ks[7], (1, HIDDEN), jnp.float32)
    return [lnpre_g, lnpre_b,
            wq, bq, wk, bk, wv, bv, wc, bc,
            lnpost_g, lnpost_b,
            w1, b1, w2, b2]


def pack_params(all_params):
    """Pack per-layer params into 3 layer-stacked slabs for the fused kernel."""
    w_in_l, w2_l, bias_l = [], [], []
    for p in all_params:
        (lnpre_g, lnpre_b, wq, bq, wk, bk, wv, bv, wc, bc,
         lnpost_g, lnpost_b, w1, b1, w2, b2) = p
        w_in_l.append(jnp.concatenate([wq, wk, wv, wc, w1], axis=1))  # (D, 256)
        w2_l.append(w2)                                               # (4D, D)
        bias = jnp.zeros((8, 128), jnp.float32)
        bias = bias.at[0, :HIDDEN].set(lnpre_g[0])
        bias = bias.at[1, :HIDDEN].set(lnpre_b[0])
        bias = bias.at[2, :HIDDEN].set(lnpost_g[0])
        bias = bias.at[3, :HIDDEN].set(lnpost_b[0])
        bias = bias.at[4, :3 * HIDDEN].set(
            jnp.concatenate([bq, bk, bv], axis=1)[0])
        bias = bias.at[5, :HIDDEN].set(bc[0])
        bias = bias.at[6, :INTERMEDIATE].set(b1[0])
        bias = bias.at[7, :HIDDEN].set(b2[0])
        bias_l.append(bias)
    return (jnp.stack(w_in_l), jnp.stack(w2_l), jnp.stack(bias_l))


# ------------------------- pure-JAX reference -------------------------
def ref_layer(x, p):
    (lnpre_g, lnpre_b, wq, bq, wk, bk, wv, bv, wc, bc,
     lnpost_g, lnpost_b, w1, b1, w2, b2) = p
    B, S, D = x.shape

    def ln(y, g, b):
        mu = jnp.mean(y, axis=-1, keepdims=True)
        var = jnp.mean((y - mu) ** 2, axis=-1, keepdims=True)
        return (y - mu) / jnp.sqrt(var + EPS) * g + b

    h = ln(x, lnpre_g, lnpre_b)
    q = h @ wq + bq
    k = h @ wk + bk
    v = h @ wv + bv
    q = q.reshape(B, S, NUM_HEADS, HEAD_DIM).transpose(0, 2, 1, 3)
    k = k.reshape(B, S, NUM_HEADS, HEAD_DIM).transpose(0, 2, 1, 3)
    v = v.reshape(B, S, NUM_HEADS, HEAD_DIM).transpose(0, 2, 1, 3)
    s = jnp.einsum("bhqd,bhkd->bhqk", q, k) / (HEAD_DIM ** 0.5)
    p_ = jax.nn.softmax(s, axis=-1)
    o = jnp.einsum("bhqk,bhkd->bhqd", p_, v)
    o = o.transpose(0, 2, 1, 3).reshape(B, S, D)
    x = x + (o @ wc + bc)
    h2 = ln(x, lnpost_g, lnpost_b)
    ff = h2 @ w1 + b1
    ff = ff * jax.nn.sigmoid(1.702 * ff)
    ff = ff @ w2 + b2
    return x + ff


def ref_encoder(x, all_params):
    for p in all_params:
        x = ref_layer(x, p)
    return x


# ------------------------------- main -------------------------------
if __name__ == "__main__":
    root = jax.random.PRNGKey(0)
    kx, kp = jax.random.split(root)
    x = jax.random.normal(kx, (BATCH, SEQ, HIDDEN), jnp.float32)

    layer_keys = jax.random.split(kp, NUM_LAYERS)
    all_params = [init_layer_params(k) for k in layer_keys]
    packed = pack_params(all_params)

    out = vit_encoder(x, packed)
    out = jax.block_until_ready(out)

    ref = ref_encoder(x, all_params)
    assert out.shape == (BATCH, SEQ, HIDDEN)
    max_err = float(jnp.max(jnp.abs(out - ref)))
    assert jnp.allclose(out, ref, atol=5e-4, rtol=5e-4), max_err

    print("KERNEL_OK")
</pallas_src>

<mosaic_0001>
module attributes {stable_mosaic.version = 11 : i64} {
  func.func @vit_encoder_kernel(%arg0: memref<16x32xf32, #tpu.memory_space<vmem>>, %arg1: memref<2x32x256xf32, #tpu.memory_space<vmem>>, %arg2: memref<2x128x32xf32, #tpu.memory_space<vmem>>, %arg3: memref<2x8x128xf32, #tpu.memory_space<vmem>>, %arg4: memref<16x32xf32, #tpu.memory_space<vmem>>) attributes {dimension_semantics = [], scalar_prefetch = 0 : i64, scratch_operands = 0 : i64, tpu.core_type = #tpu.core_type<tc>} {
    %c0 = arith.constant 0 : index
    %c0_0 = arith.constant 0 : index
    %0 = vector.load %arg0[%c0, %c0_0] : memref<16x32xf32, #tpu.memory_space<vmem>>, vector<16x32xf32>
    %c0_1 = arith.constant 0 : index
    %c0_2 = arith.constant 0 : index
    %c0_3 = arith.constant 0 : index
    %1 = vector.load %arg1[%c0_1, %c0_2, %c0_3] : memref<2x32x256xf32, #tpu.memory_space<vmem>>, vector<1x32x256xf32>
    %2 = vector.shape_cast %1 : vector<1x32x256xf32> to vector<32x256xf32>
    %c0_4 = arith.constant 0 : index
    %c0_5 = arith.constant 0 : index
    %c0_6 = arith.constant 0 : index
    %3 = vector.load %arg2[%c0_4, %c0_5, %c0_6] : memref<2x128x32xf32, #tpu.memory_space<vmem>>, vector<1x128x32xf32>
    %4 = vector.shape_cast %3 : vector<1x128x32xf32> to vector<128x32xf32>
    %c0_7 = arith.constant 0 : index
    %c0_8 = arith.constant 0 : index
    %c0_9 = arith.constant 0 : index
    %5 = vector.load %arg3[%c0_7, %c0_8, %c0_9] : memref<2x8x128xf32, #tpu.memory_space<vmem>>, vector<1x8x128xf32>
    %6 = vector.shape_cast %5 : vector<1x8x128xf32> to vector<8x128xf32>
    %7 = vector.extract_strided_slice %2 {offsets = [0, 0], sizes = [32, 96], strides = [1, 1]} : vector<32x256xf32> to vector<32x96xf32>
    %8 = vector.extract_strided_slice %2 {offsets = [0, 96], sizes = [32, 32], strides = [1, 1]} : vector<32x256xf32> to vector<32x32xf32>
    %9 = vector.extract_strided_slice %2 {offsets = [0, 128], sizes = [32, 128], strides = [1, 1]} : vector<32x256xf32> to vector<32x128xf32>
    %10 = vector.extract_strided_slice %6 {offsets = [0, 0], sizes = [1, 32], strides = [1, 1]} : vector<8x128xf32> to vector<1x32xf32>
    %11 = vector.extract_strided_slice %6 {offsets = [1, 0], sizes = [1, 32], strides = [1, 1]} : vector<8x128xf32> to vector<1x32xf32>
    %12 = vector.extract_strided_slice %6 {offsets = [2, 0], sizes = [1, 32], strides = [1, 1]} : vector<8x128xf32> to vector<1x32xf32>
    %13 = vector.extract_strided_slice %6 {offsets = [3, 0], sizes = [1, 32], strides = [1, 1]} : vector<8x128xf32> to vector<1x32xf32>
    %14 = vector.extract_strided_slice %6 {offsets = [4, 0], sizes = [1, 96], strides = [1, 1]} : vector<8x128xf32> to vector<1x96xf32>
    %15 = vector.extract_strided_slice %6 {offsets = [5, 0], sizes = [1, 32], strides = [1, 1]} : vector<8x128xf32> to vector<1x32xf32>
    %16 = vector.extract_strided_slice %6 {offsets = [6, 0], sizes = [1, 128], strides = [1, 1]} : vector<8x128xf32> to vector<1x128xf32>
    %17 = vector.extract_strided_slice %6 {offsets = [7, 0], sizes = [1, 32], strides = [1, 1]} : vector<8x128xf32> to vector<1x32xf32>
    %cst = arith.constant dense<0.000000e+00> : vector<16xf32>
    %18 = vector.multi_reduction <add>, %0, %cst [1] : vector<16x32xf32> to vector<16xf32>
    %19 = vector.shape_cast %18 : vector<16xf32> to vector<16x1xf32>
    %cst_10 = arith.constant 3.200000e+01 : f32
    %20 = vector.broadcast %cst_10 : f32 to vector<16x1xf32>
    %21 = arith.divf %19, %20 : vector<16x1xf32>
    %22 = vector.broadcast %21 : vector<16x1xf32> to vector<16x32xf32>
    %23 = arith.subf %0, %22 : vector<16x32xf32>
    %24 = arith.mulf %23, %23 : vector<16x32xf32>
    %cst_11 = arith.constant dense<0.000000e+00> : vector<16xf32>
    %25 = vector.multi_reduction <add>, %24, %cst_11 [1] : vector<16x32xf32> to vector<16xf32>
    %26 = vector.shape_cast %25 : vector<16xf32> to vector<16x1xf32>
    %cst_12 = arith.constant 3.200000e+01 : f32
    %27 = vector.broadcast %cst_12 : f32 to vector<16x1xf32>
    %28 = arith.divf %26, %27 : vector<16x1xf32>
    %29 = vector.broadcast %21 : vector<16x1xf32> to vector<16x32xf32>
    %30 = arith.subf %0, %29 : vector<16x32xf32>
    %cst_13 = arith.constant 9.99999997E-7 : f32
    %31 = vector.broadcast %cst_13 : f32 to vector<16x1xf32>
    %32 = arith.addf %28, %31 : vector<16x1xf32>
    %33 = math.rsqrt %32 : vector<16x1xf32>
    %34 = vector.broadcast %33 : vector<16x1xf32> to vector<16x32xf32>
    %35 = arith.mulf %30, %34 : vector<16x32xf32>
    %36 = vector.broadcast %10 : vector<1x32xf32> to vector<16x32xf32>
    %37 = arith.mulf %35, %36 : vector<16x32xf32>
    %38 = vector.broadcast %11 : vector<1x32xf32> to vector<16x32xf32>
    %39 = arith.addf %37, %38 : vector<16x32xf32>
    %cst_14 = arith.constant dense<0.000000e+00> : vector<16x96xf32>
    %40 = tpu.matmul %39, %7, %cst_14 {dimension_numbers = #tpu.dot_dimension_numbers<[1], [0], [0], [1], [0, 0, 1, 1], [], []>} : vector<16x32xf32>, vector<32x96xf32>, vector<16x96xf32> -> vector<16x96xf32>
    %41 = vector.broadcast %14 : vector<1x96xf32> to vector<16x96xf32>
    %42 = arith.addf %40, %41 : vector<16x96xf32>
    %43 = vector.extract_strided_slice %42 {offsets = [0, 0], sizes = [16, 32], strides = [1, 1]} : vector<16x96xf32> to vector<16x32xf32>
    %cst_15 = arith.constant 0.353553385 : f32
    %44 = vector.broadcast %cst_15 : f32 to vector<16x32xf32>
    %45 = arith.mulf %43, %44 : vector<16x32xf32>
    %46 = vector.extract_strided_slice %42 {offsets = [0, 32], sizes = [16, 32], strides = [1, 1]} : vector<16x96xf32> to vector<16x32xf32>
    %47 = vector.extract_strided_slice %42 {offsets = [0, 64], sizes = [16, 32], strides = [1, 1]} : vector<16x96xf32> to vector<16x32xf32>
    %48 = vector.extract_strided_slice %45 {offsets = [0, 0], sizes = [8, 8], strides = [1, 1]} : vector<16x32xf32> to vector<8x8xf32>
    %49 = vector.extract_strided_slice %45 {offsets = [0, 8], sizes = [8, 8], strides = [1, 1]} : vector<16x32xf32> to vector<8x8xf32>
    %50 = vector.extract_strided_slice %45 {offsets = [0, 16], sizes = [8, 8], strides = [1, 1]} : vector<16x32xf32> to vector<8x8xf32>
    %51 = vector.extract_strided_slice %45 {offsets = [0, 24], sizes = [8, 8], strides = [1, 1]} : vector<16x32xf32> to vector<8x8xf32>
    %52 = vector.extract_strided_slice %45 {offsets = [8, 0], sizes = [8, 8], strides = [1, 1]} : vector<16x32xf32> to vector<8x8xf32>
    %53 = vector.extract_strided_slice %45 {offsets = [8, 8], sizes = [8, 8], strides = [1, 1]} : vector<16x32xf32> to vector<8x8xf32>
    %54 = vector.extract_strided_slice %45 {offsets = [8, 16], sizes = [8, 8], strides = [1, 1]} : vector<16x32xf32> to vector<8x8xf32>
    %55 = vector.extract_strided_slice %45 {offsets = [8, 24], sizes = [8, 8], strides = [1, 1]} : vector<16x32xf32> to vector<8x8xf32>
    %56 = vector.shape_cast %48 : vector<8x8xf32> to vector<1x8x8xf32>
    %57 = vector.shape_cast %49 : vector<8x8xf32> to vector<1x8x8xf32>
    %58 = vector.shape_cast %50 : vector<8x8xf32> to vector<1x8x8xf32>
    %59 = vector.shape_cast %51 : vector<8x8xf32> to vector<1x8x8xf32>
    %60 = vector.shape_cast %52 : vector<8x8xf32> to vector<1x8x8xf32>
    %61 = vector.shape_cast %53 : vector<8x8xf32> to vector<1x8x8xf32>
    %62 = vector.shape_cast %54 : vector<8x8xf32> to vector<1x8x8xf32>
    %63 = vector.shape_cast %55 : vector<8x8xf32> to vector<1x8x8xf32>
    %64 = tpu.concatenate %56, %57, %58, %59, %60, %61, %62, %63 in 0 : vector<1x8x8xf32>, vector<1x8x8xf32>, vector<1x8x8xf32>, vector<1x8x8xf32>, vector<1x8x8xf32>, vector<1x8x8xf32>, vector<1x8x8xf32>, vector<1x8x8xf32> -> vector<8x8x8xf32>
    %65 = vector.extract_strided_slice %46 {offsets = [0, 0], sizes = [8, 8], strides = [1, 1]} : vector<16x32xf32> to vector<8x8xf32>
    %66 = vector.extract_strided_slice %46 {offsets = [0, 8], sizes = [8, 8], strides = [1, 1]} : vector<16x32xf32> to vector<8x8xf32>
    %67 = vector.extract_strided_slice %46 {offsets = [0, 16], sizes = [8, 8], strides = [1, 1]} : vector<16x32xf32> to vector<8x8xf32>
    %68 = vector.extract_strided_slice %46 {offsets = [0, 24], sizes = [8, 8], strides = [1, 1]} : vector<16x32xf32> to vector<8x8xf32>
    %69 = vector.extract_strided_slice %46 {offsets = [8, 0], sizes = [8, 8], strides = [1, 1]} : vector<16x32xf32> to vector<8x8xf32>
    %70 = vector.extract_strided_slice %46 {offsets = [8, 8], sizes = [8, 8], strides = [1, 1]} : vector<16x32xf32> to vector<8x8xf32>
    %71 = vector.extract_strided_slice %46 {offsets = [8, 16], sizes = [8, 8], strides = [1, 1]} : vector<16x32xf32> to vector<8x8xf32>
    %72 = vector.extract_strided_slice %46 {offsets = [8, 24], sizes = [8, 8], strides = [1, 1]} : vector<16x32xf32> to vector<8x8xf32>
    %73 = vector.shape_cast %65 : vector<8x8xf32> to vector<1x8x8xf32>
    %74 = vector.shape_cast %66 : vector<8x8xf32> to vector<1x8x8xf32>
    %75 = vector.shape_cast %67 : vector<8x8xf32> to vector<1x8x8xf32>
    %76 = vector.shape_cast %68 : vector<8x8xf32> to vector<1x8x8xf32>
    %77 = vector.shape_cast %69 : vector<8x8xf32> to vector<1x8x8xf32>
    %78 = vector.shape_cast %70 : vector<8x8xf32> to vector<1x8x8xf32>
    %79 = vector.shape_cast %71 : vector<8x8xf32> to vector<1x8x8xf32>
    %80 = vector.shape_cast %72 : vector<8x8xf32> to vector<1x8x8xf32>
    %81 = tpu.concatenate %73, %74, %75, %76, %77, %78, %79, %80 in 0 : vector<1x8x8xf32>, vector<1x8x8xf32>, vector<1x8x8xf32>, vector<1x8x8xf32>, vector<1x8x8xf32>, vector<1x8x8xf32>, vector<1x8x8xf32>, vector<1x8x8xf32> -> vector<8x8x8xf32>
    %82 = vector.extract_strided_slice %47 {offsets = [0, 0], sizes = [8, 8], strides = [1, 1]} : vector<16x32xf32> to vector<8x8xf32>
    %83 = vector.extract_strided_slice %47 {offsets = [0, 8], sizes = [8, 8], strides = [1, 1]} : vector<16x32xf32> to vector<8x8xf32>
    %84 = vector.extract_strided_slice %47 {offsets = [0, 16], sizes = [8, 8], strides = [1, 1]} : vector<16x32xf32> to vector<8x8xf32>
    %85 = vector.extract_strided_slice %47 {offsets = [0, 24], sizes = [8, 8], strides = [1, 1]} : vector<16x32xf32> to vector<8x8xf32>
    %86 = vector.extract_strided_slice %47 {offsets = [8, 0], sizes = [8, 8], strides = [1, 1]} : vector<16x32xf32> to vector<8x8xf32>
    %87 = vector.extract_strided_slice %47 {offsets = [8, 8], sizes = [8, 8], strides = [1, 1]} : vector<16x32xf32> to vector<8x8xf32>
    %88 = vector.extract_strided_slice %47 {offsets = [8, 16], sizes = [8, 8], strides = [1, 1]} : vector<16x32xf32> to vector<8x8xf32>
    %89 = vector.extract_strided_slice %47 {offsets = [8, 24], sizes = [8, 8], strides = [1, 1]} : vector<16x32xf32> to vector<8x8xf32>
    %90 = vector.shape_cast %82 : vector<8x8xf32> to vector<1x8x8xf32>
    %91 = vector.shape_cast %83 : vector<8x8xf32> to vector<1x8x8xf32>
    %92 = vector.shape_cast %84 : vector<8x8xf32> to vector<1x8x8xf32>
    %93 = vector.shape_cast %85 : vector<8x8xf32> to vector<1x8x8xf32>
    %94 = vector.shape_cast %86 : vector<8x8xf32> to vector<1x8x8xf32>
    %95 = vector.shape_cast %87 : vector<8x8xf32> to vector<1x8x8xf32>
    %96 = vector.shape_cast %88 : vector<8x8xf32> to vector<1x8x8xf32>
    %97 = vector.shape_cast %89 : vector<8x8xf32> to vector<1x8x8xf32>
    %98 = tpu.concatenate %90, %91, %92, %93, %94, %95, %96, %97 in 0 : vector<1x8x8xf32>, vector<1x8x8xf32>, vector<1x8x8xf32>, vector<1x8x8xf32>, vector<1x8x8xf32>, vector<1x8x8xf32>, vector<1x8x8xf32>, vector<1x8x8xf32> -> vector<8x8x8xf32>
    "tpu.trace_start"() <{level = 10 : i32, message = "bqd,bkd->bqk"}> : () -> ()
    %cst_16 = arith.constant dense<0.000000e+00> : vector<8x8x8xf32>
    %99 = tpu.matmul %64, %81, %cst_16 {dimension_numbers = #tpu.dot_dimension_numbers<[2], [2], [1], [1], [0, 0, 0, 1, 1, 1], [0], [0]>} : vector<8x8x8xf32>, vector<8x8x8xf32>, vector<8x8x8xf32> -> vector<8x8x8xf32>
    "tpu.trace_stop"() : () -> ()
    %cst_17 = arith.constant dense<0xFF800000> : vector<8x8xf32>
    %100 = vector.multi_reduction <maximumf>, %99, %cst_17 [2] : vector<8x8x8xf32> to vector<8x8xf32>
    %101 = vector.shape_cast %100 : vector<8x8xf32> to vector<8x8x1xf32>
    %102 = vector.broadcast %101 : vector<8x8x1xf32> to vector<8x8x8xf32>
    %103 = arith.subf %99, %102 : vector<8x8x8xf32>
    %104 = math.exp %103 : vector<8x8x8xf32>
    %cst_18 = arith.constant dense<0.000000e+00> : vector<8x8xf32>
    %105 = vector.multi_reduction <add>, %104, %cst_18 [2] : vector<8x8x8xf32> to vector<8x8xf32>
    %106 = vector.shape_cast %105 : vector<8x8xf32> to vector<8x8x1xf32>
    %107 = tpu.reciprocal %106 {approx = true} : vector<8x8x1xf32> -> vector<8x8x1xf32>
    %108 = vector.broadcast %107 : vector<8x8x1xf32> to vector<8x8x8xf32>
    %109 = arith.mulf %104, %108 : vector<8x8x8xf32>
    "tpu.trace_start"() <{level = 10 : i32, message = "bqk,bkd->bqd"}> : () -> ()
    %cst_19 = arith.constant dense<0.000000e+00> : vector<8x8x8xf32>
    %110 = tpu.matmul %109, %98, %cst_19 {dimension_numbers = #tpu.dot_dimension_numbers<[2], [1], [1], [2], [0, 0, 0, 1, 1, 2], [0], [0]>} : vector<8x8x8xf32>, vector<8x8x8xf32>, vector<8x8x8xf32> -> vector<8x8x8xf32>
    "tpu.trace_stop"() : () -> ()
    %111 = vector.extract_strided_slice %110 {offsets = [0, 0, 0], sizes = [1, 8, 8], strides = [1, 1, 1]} : vector<8x8x8xf32> to vector<1x8x8xf32>
    %112 = vector.shape_cast %111 : vector<1x8x8xf32> to vector<8x8xf32>
    %113 = vector.extract_strided_slice %110 {offsets = [1, 0, 0], sizes = [1, 8, 8], strides = [1, 1, 1]} : vector<8x8x8xf32> to vector<1x8x8xf32>
    %114 = vector.shape_cast %113 : vector<1x8x8xf32> to vector<8x8xf32>
    %115 = vector.extract_strided_slice %110 {offsets = [2, 0, 0], sizes = [1, 8, 8], strides = [1, 1, 1]} : vector<8x8x8xf32> to vector<1x8x8xf32>
    %116 = vector.shape_cast %115 : vector<1x8x8xf32> to vector<8x8xf32>
    %117 = vector.extract_strided_slice %110 {offsets = [3, 0, 0], sizes = [1, 8, 8], strides = [1, 1, 1]} : vector<8x8x8xf32> to vector<1x8x8xf32>
    %118 = vector.shape_cast %117 : vector<1x8x8xf32> to vector<8x8xf32>
    %119 = tpu.concatenate %112, %114, %116, %118 in 1 : vector<8x8xf32>, vector<8x8xf32>, vector<8x8xf32>, vector<8x8xf32> -> vector<8x32xf32>
    %120 = vector.extract_strided_slice %110 {offsets = [4, 0, 0], sizes = [1, 8, 8], strides = [1, 1, 1]} : vector<8x8x8xf32> to vector<1x8x8xf32>
    %121 = vector.shape_cast %120 : vector<1x8x8xf32> to vector<8x8xf32>
    %122 = vector.extract_strided_slice %110 {offsets = [5, 0, 0], sizes = [1, 8, 8], strides = [1, 1, 1]} : vector<8x8x8xf32> to vector<1x8x8xf32>
    %123 = vector.shape_cast %122 : vector<1x8x8xf32> to vector<8x8xf32>
    %124 = vector.extract_strided_slice %110 {offsets = [6, 0, 0], sizes = [1, 8, 8], strides = [1, 1, 1]} : vector<8x8x8xf32> to vector<1x8x8xf32>
    %125 = vector.shape_cast %124 : vector<1x8x8xf32> to vector<8x8xf32>
    %126 = vector.extract_strided_slice %110 {offsets = [7, 0, 0], sizes = [1, 8, 8], strides = [1, 1, 1]} : vector<8x8x8xf32> to vector<1x8x8xf32>
    %127 = vector.shape_cast %126 : vector<1x8x8xf32> to vector<8x8xf32>
    %128 = tpu.concatenate %121, %123, %125, %127 in 1 : vector<8x8xf32>, vector<8x8xf32>, vector<8x8xf32>, vector<8x8xf32> -> vector<8x32xf32>
    %129 = tpu.concatenate %119, %128 in 0 : vector<8x32xf32>, vector<8x32xf32> -> vector<16x32xf32>
    %cst_20 = arith.constant dense<0.000000e+00> : vector<16x32xf32>
    %130 = tpu.matmul %129, %8, %cst_20 {dimension_numbers = #tpu.dot_dimension_numbers<[1], [0], [0], [1], [0, 0, 1, 1], [], []>} : vector<16x32xf32>, vector<32x32xf32>, vector<16x32xf32> -> vector<16x32xf32>
    %131 = vector.broadcast %15 : vector<1x32xf32> to vector<16x32xf32>
    %132 = arith.addf %130, %131 : vector<16x32xf32>
    %133 = arith.addf %0, %132 : vector<16x32xf32>
    %cst_21 = arith.constant dense<0.000000e+00> : vector<16xf32>
    %134 = vector.multi_reduction <add>, %133, %cst_21 [1] : vector<16x32xf32> to vector<16xf32>
    %135 = vector.shape_cast %134 : vector<16xf32> to vector<16x1xf32>
    %cst_22 = arith.constant 3.200000e+01 : f32
    %136 = vector.broadcast %cst_22 : f32 to vector<16x1xf32>
    %137 = arith.divf %135, %136 : vector<16x1xf32>
    %138 = vector.broadcast %137 : vector<16x1xf32> to vector<16x32xf32>
    %139 = arith.subf %133, %138 : vector<16x32xf32>
    %140 = arith.mulf %139, %139 : vector<16x32xf32>
    %cst_23 = arith.constant dense<0.000000e+00> : vector<16xf32>
    %141 = vector.multi_reduction <add>, %140, %cst_23 [1] : vector<16x32xf32> to vector<16xf32>
    %142 = vector.shape_cast %141 : vector<16xf32> to vector<16x1xf32>
    %cst_24 = arith.constant 3.200000e+01 : f32
    %143 = vector.broadcast %cst_24 : f32 to vector<16x1xf32>
    %144 = arith.divf %142, %143 : vector<16x1xf32>
    %145 = vector.broadcast %137 : vector<16x1xf32> to vector<16x32xf32>
    %146 = arith.subf %133, %145 : vector<16x32xf32>
    %cst_25 = arith.constant 9.99999997E-7 : f32
    %147 = vector.broadcast %cst_25 : f32 to vector<16x1xf32>
    %148 = arith.addf %144, %147 : vector<16x1xf32>
    %149 = math.rsqrt %148 : vector<16x1xf32>
    %150 = vector.broadcast %149 : vector<16x1xf32> to vector<16x32xf32>
    %151 = arith.mulf %146, %150 : vector<16x32xf32>
    %152 = vector.broadcast %12 : vector<1x32xf32> to vector<16x32xf32>
    %153 = arith.mulf %151, %152 : vector<16x32xf32>
    %154 = vector.broadcast %13 : vector<1x32xf32> to vector<16x32xf32>
    %155 = arith.addf %153, %154 : vector<16x32xf32>
    %cst_26 = arith.constant dense<0.000000e+00> : vector<16x128xf32>
    %156 = tpu.matmul %155, %9, %cst_26 {dimension_numbers = #tpu.dot_dimension_numbers<[1], [0], [0], [1], [0, 0, 1, 1], [], []>} : vector<16x32xf32>, vector<32x128xf32>, vector<16x128xf32> -> vector<16x128xf32>
    %157 = vector.broadcast %16 : vector<1x128xf32> to vector<16x128xf32>
    %158 = arith.addf %156, %157 : vector<16x128xf32>
    %cst_27 = arith.constant 1.702000e+00 : f32
    %159 = vector.broadcast %cst_27 : f32 to vector<16x128xf32>
    %160 = arith.mulf %159, %158 : vector<16x128xf32>
    %161 = arith.negf %160 : vector<16x128xf32>
    %162 = math.exp %161 : vector<16x128xf32>
    %cst_28 = arith.constant 1.000000e+00 : f32
    %163 = vector.broadcast %cst_28 : f32 to vector<16x128xf32>
    %164 = arith.addf %163, %162 : vector<16x128xf32>
    %165 = arith.divf %163, %164 : vector<16x128xf32>
    %166 = arith.mulf %158, %165 : vector<16x128xf32>
    %cst_29 = arith.constant dense<0.000000e+00> : vector<16x32xf32>
    %167 = tpu.matmul %166, %4, %cst_29 {dimension_numbers = #tpu.dot_dimension_numbers<[1], [0], [0], [1], [0, 0, 1, 1], [], []>} : vector<16x128xf32>, vector<128x32xf32>, vector<16x32xf32> -> vector<16x32xf32>
    %168 = vector.broadcast %17 : vector<1x32xf32> to vector<16x32xf32>
    %169 = arith.addf %167, %168 : vector<16x32xf32>
    %170 = arith.addf %133, %169 : vector<16x32xf32>
    %c1 = arith.constant 1 : index
    %c0_30 = arith.constant 0 : index
    %c0_31 = arith.constant 0 : index
    %171 = vector.load %arg1[%c1, %c0_30, %c0_31] : memref<2x32x256xf32, #tpu.memory_space<vmem>>, vector<1x32x256xf32>
    %172 = vector.shape_cast %171 : vector<1x32x256xf32> to vector<32x256xf32>
    %c1_32 = arith.constant 1 : index
    %c0_33 = arith.constant 0 : index
    %c0_34 = arith.constant 0 : index
    %173 = vector.load %arg2[%c1_32, %c0_33, %c0_34] : memref<2x128x32xf32, #tpu.memory_space<vmem>>, vector<1x128x32xf32>
    %174 = vector.shape_cast %173 : vector<1x128x32xf32> to vector<128x32xf32>
    %c1_35 = arith.constant 1 : index
    %c0_36 = arith.constant 0 : index
    %c0_37 = arith.constant 0 : index
    %175 = vector.load %arg3[%c1_35, %c0_36, %c0_37] : memref<2x8x128xf32, #tpu.memory_space<vmem>>, vector<1x8x128xf32>
    %176 = vector.shape_cast %175 : vector<1x8x128xf32> to vector<8x128xf32>
    %177 = vector.extract_strided_slice %172 {offsets = [0, 0], sizes = [32, 96], strides = [1, 1]} : vector<32x256xf32> to vector<32x96xf32>
    %178 = vector.extract_strided_slice %172 {offsets = [0, 96], sizes = [32, 32], strides = [1, 1]} : vector<32x256xf32> to vector<32x32xf32>
    %179 = vector.extract_strided_slice %172 {offsets = [0, 128], sizes = [32, 128], strides = [1, 1]} : vector<32x256xf32> to vector<32x128xf32>
    %180 = vector.extract_strided_slice %176 {offsets = [0, 0], sizes = [1, 32], strides = [1, 1]} : vector<8x128xf32> to vector<1x32xf32>
    %181 = vector.extract_strided_slice %176 {offsets = [1, 0], sizes = [1, 32], strides = [1, 1]} : vector<8x128xf32> to vector<1x32xf32>
    %182 = vector.extract_strided_slice %176 {offsets = [2, 0], sizes = [1, 32], strides = [1, 1]} : vector<8x128xf32> to vector<1x32xf32>
    %183 = vector.extract_strided_slice %176 {offsets = [3, 0], sizes = [1, 32], strides = [1, 1]} : vector<8x128xf32> to vector<1x32xf32>
    %184 = vector.extract_strided_slice %176 {offsets = [4, 0], sizes = [1, 96], strides = [1, 1]} : vector<8x128xf32> to vector<1x96xf32>
    %185 = vector.extract_strided_slice %176 {offsets = [5, 0], sizes = [1, 32], strides = [1, 1]} : vector<8x128xf32> to vector<1x32xf32>
    %186 = vector.extract_strided_slice %176 {offsets = [6, 0], sizes = [1, 128], strides = [1, 1]} : vector<8x128xf32> to vector<1x128xf32>
    %187 = vector.extract_strided_slice %176 {offsets = [7, 0], sizes = [1, 32], strides = [1, 1]} : vector<8x128xf32> to vector<1x32xf32>
    %cst_38 = arith.constant dense<0.000000e+00> : vector<16xf32>
    %188 = vector.multi_reduction <add>, %170, %cst_38 [1] : vector<16x32xf32> to vector<16xf32>
    %189 = vector.shape_cast %188 : vector<16xf32> to vector<16x1xf32>
    %cst_39 = arith.constant 3.200000e+01 : f32
    %190 = vector.broadcast %cst_39 : f32 to vector<16x1xf32>
    %191 = arith.divf %189, %190 : vector<16x1xf32>
    %192 = vector.broadcast %191 : vector<16x1xf32> to vector<16x32xf32>
    %193 = arith.subf %170, %192 : vector<16x32xf32>
    %194 = arith.mulf %193, %193 : vector<16x32xf32>
    %cst_40 = arith.constant dense<0.000000e+00> : vector<16xf32>
    %195 = vector.multi_reduction <add>, %194, %cst_40 [1] : vector<16x32xf32> to vector<16xf32>
    %196 = vector.shape_cast %195 : vector<16xf32> to vector<16x1xf32>
    %cst_41 = arith.constant 3.200000e+01 : f32
    %197 = vector.broadcast %cst_41 : f32 to vector<16x1xf32>
    %198 = arith.divf %196, %197 : vector<16x1xf32>
    %199 = vector.broadcast %191 : vector<16x1xf32> to vector<16x32xf32>
    %200 = arith.subf %170, %199 : vector<16x32xf32>
    %cst_42 = arith.constant 9.99999997E-7 : f32
    %201 = vector.broadcast %cst_42 : f32 to vector<16x1xf32>
    %202 = arith.addf %198, %201 : vector<16x1xf32>
    %203 = math.rsqrt %202 : vector<16x1xf32>
    %204 = vector.broadcast %203 : vector<16x1xf32> to vector<16x32xf32>
    %205 = arith.mulf %200, %204 : vector<16x32xf32>
    %206 = vector.broadcast %180 : vector<1x32xf32> to vector<16x32xf32>
    %207 = arith.mulf %205, %206 : vector<16x32xf32>
    %208 = vector.broadcast %181 : vector<1x32xf32> to vector<16x32xf32>
    %209 = arith.addf %207, %208 : vector<16x32xf32>
    %cst_43 = arith.constant dense<0.000000e+00> : vector<16x96xf32>
    %210 = tpu.matmul %209, %177, %cst_43 {dimension_numbers = #tpu.dot_dimension_numbers<[1], [0], [0], [1], [0, 0, 1, 1], [], []>} : vector<16x32xf32>, vector<32x96xf32>, vector<16x96xf32> -> vector<16x96xf32>
    %211 = vector.broadcast %184 : vector<1x96xf32> to vector<16x96xf32>
    %212 = arith.addf %210, %211 : vector<16x96xf32>
    %213 = vector.extract_strided_slice %212 {offsets = [0, 0], sizes = [16, 32], strides = [1, 1]} : vector<16x96xf32> to vector<16x32xf32>
    %cst_44 = arith.constant 0.353553385 : f32
    %214 = vector.broadcast %cst_44 : f32 to vector<16x32xf32>
    %215 = arith.mulf %213, %214 : vector<16x32xf32>
    %216 = vector.extract_strided_slice %212 {offsets = [0, 32], sizes = [16, 32], strides = [1, 1]} : vector<16x96xf32> to vector<16x32xf32>
    %217 = vector.extract_strided_slice %212 {offsets = [0, 64], sizes = [16, 32], strides = [1, 1]} : vector<16x96xf32> to vector<16x32xf32>
    %218 = vector.extract_strided_slice %215 {offsets = [0, 0], sizes = [8, 8], strides = [1, 1]} : vector<16x32xf32> to vector<8x8xf32>
    %219 = vector.extract_strided_slice %215 {offsets = [0, 8], sizes = [8, 8], strides = [1, 1]} : vector<16x32xf32> to vector<8x8xf32>
    %220 = vector.extract_strided_slice %215 {offsets = [0, 16], sizes = [8, 8], strides = [1, 1]} : vector<16x32xf32> to vector<8x8xf32>
    %221 = vector.extract_strided_slice %215 {offsets = [0, 24], sizes = [8, 8], strides = [1, 1]} : vector<16x32xf32> to vector<8x8xf32>
    %222 = vector.extract_strided_slice %215 {offsets = [8, 0], sizes = [8, 8], strides = [1, 1]} : vector<16x32xf32> to vector<8x8xf32>
    %223 = vector.extract_strided_slice %215 {offsets = [8, 8], sizes = [8, 8], strides = [1, 1]} : vector<16x32xf32> to vector<8x8xf32>
    %224 = vector.extract_strided_slice %215 {offsets = [8, 16], sizes = [8, 8], strides = [1, 1]} : vector<16x32xf32> to vector<8x8xf32>
    %225 = vector.extract_strided_slice %215 {offsets = [8, 24], sizes = [8, 8], strides = [1, 1]} : vector<16x32xf32> to vector<8x8xf32>
    %226 = vector.shape_cast %218 : vector<8x8xf32> to vector<1x8x8xf32>
    %227 = vector.shape_cast %219 : vector<8x8xf32> to vector<1x8x8xf32>
    %228 = vector.shape_cast %220 : vector<8x8xf32> to vector<1x8x8xf32>
    %229 = vector.shape_cast %221 : vector<8x8xf32> to vector<1x8x8xf32>
    %230 = vector.shape_cast %222 : vector<8x8xf32> to vector<1x8x8xf32>
    %231 = vector.shape_cast %223 : vector<8x8xf32> to vector<1x8x8xf32>
    %232 = vector.shape_cast %224 : vector<8x8xf32> to vector<1x8x8xf32>
    %233 = vector.shape_cast %225 : vector<8x8xf32> to vector<1x8x8xf32>
    %234 = tpu.concatenate %226, %227, %228, %229, %230, %231, %232, %233 in 0 : vector<1x8x8xf32>, vector<1x8x8xf32>, vector<1x8x8xf32>, vector<1x8x8xf32>, vector<1x8x8xf32>, vector<1x8x8xf32>, vector<1x8x8xf32>, vector<1x8x8xf32> -> vector<8x8x8xf32>
    %235 = vector.extract_strided_slice %216 {offsets = [0, 0], sizes = [8, 8], strides = [1, 1]} : vector<16x32xf32> to vector<8x8xf32>
    %236 = vector.extract_strided_slice %216 {offsets = [0, 8], sizes = [8, 8], strides = [1, 1]} : vector<16x32xf32> to vector<8x8xf32>
    %237 = vector.extract_strided_slice %216 {offsets = [0, 16], sizes = [8, 8], strides = [1, 1]} : vector<16x32xf32> to vector<8x8xf32>
    %238 = vector.extract_strided_slice %216 {offsets = [0, 24], sizes = [8, 8], strides = [1, 1]} : vector<16x32xf32> to vector<8x8xf32>
    %239 = vector.extract_strided_slice %216 {offsets = [8, 0], sizes = [8, 8], strides = [1, 1]} : vector<16x32xf32> to vector<8x8xf32>
    %240 = vector.extract_strided_slice %216 {offsets = [8, 8], sizes = [8, 8], strides = [1, 1]} : vector<16x32xf32> to vector<8x8xf32>
    %241 = vector.extract_strided_slice %216 {offsets = [8, 16], sizes = [8, 8], strides = [1, 1]} : vector<16x32xf32> to vector<8x8xf32>
    %242 = vector.extract_strided_slice %216 {offsets = [8, 24], sizes = [8, 8], strides = [1, 1]} : vector<16x32xf32> to vector<8x8xf32>
    %243 = vector.shape_cast %235 : vector<8x8xf32> to vector<1x8x8xf32>
    %244 = vector.shape_cast %236 : vector<8x8xf32> to vector<1x8x8xf32>
    %245 = vector.shape_cast %237 : vector<8x8xf32> to vector<1x8x8xf32>
    %246 = vector.shape_cast %238 : vector<8x8xf32> to vector<1x8x8xf32>
    %247 = vector.shape_cast %239 : vector<8x8xf32> to vector<1x8x8xf32>
    %248 = vector.shape_cast %240 : vector<8x8xf32> to vector<1x8x8xf32>
    %249 = vector.shape_cast %241 : vector<8x8xf32> to vector<1x8x8xf32>
    %250 = vector.shape_cast %242 : vector<8x8xf32> to vector<1x8x8xf32>
    %251 = tpu.concatenate %243, %244, %245, %246, %247, %248, %249, %250 in 0 : vector<1x8x8xf32>, vector<1x8x8xf32>, vector<1x8x8xf32>, vector<1x8x8xf32>, vector<1x8x8xf32>, vector<1x8x8xf32>, vector<1x8x8xf32>, vector<1x8x8xf32> -> vector<8x8x8xf32>
    %252 = vector.extract_strided_slice %217 {offsets = [0, 0], sizes = [8, 8], strides = [1, 1]} : vector<16x32xf32> to vector<8x8xf32>
    %253 = vector.extract_strided_slice %217 {offsets = [0, 8], sizes = [8, 8], strides = [1, 1]} : vector<16x32xf32> to vector<8x8xf32>
    %254 = vector.extract_strided_slice %217 {offsets = [0, 16], sizes = [8, 8], strides = [1, 1]} : vector<16x32xf32> to vector<8x8xf32>
    %255 = vector.extract_strided_slice %217 {offsets = [0, 24], sizes = [8, 8], strides = [1, 1]} : vector<16x32xf32> to vector<8x8xf32>
    %256 = vector.extract_strided_slice %217 {offsets = [8, 0], sizes = [8, 8], strides = [1, 1]} : vector<16x32xf32> to vector<8x8xf32>
    %257 = vector.extract_strided_slice %217 {offsets = [8, 8], sizes = [8, 8], strides = [1, 1]} : vector<16x32xf32> to vector<8x8xf32>
    %258 = vector.extract_strided_slice %217 {offsets = [8, 16], sizes = [8, 8], strides = [1, 1]} : vector<16x32xf32> to vector<8x8xf32>
    %259 = vector.extract_strided_slice %217 {offsets = [8, 24], sizes = [8, 8], strides = [1, 1]} : vector<16x32xf32> to vector<8x8xf32>
    %260 = vector.shape_cast %252 : vector<8x8xf32> to vector<1x8x8xf32>
    %261 = vector.shape_cast %253 : vector<8x8xf32> to vector<1x8x8xf32>
    %262 = vector.shape_cast %254 : vector<8x8xf32> to vector<1x8x8xf32>
    %263 = vector.shape_cast %255 : vector<8x8xf32> to vector<1x8x8xf32>
    %264 = vector.shape_cast %256 : vector<8x8xf32> to vector<1x8x8xf32>
    %265 = vector.shape_cast %257 : vector<8x8xf32> to vector<1x8x8xf32>
    %266 = vector.shape_cast %258 : vector<8x8xf32> to vector<1x8x8xf32>
    %267 = vector.shape_cast %259 : vector<8x8xf32> to vector<1x8x8xf32>
    %268 = tpu.concatenate %260, %261, %262, %263, %264, %265, %266, %267 in 0 : vector<1x8x8xf32>, vector<1x8x8xf32>, vector<1x8x8xf32>, vector<1x8x8xf32>, vector<1x8x8xf32>, vector<1x8x8xf32>, vector<1x8x8xf32>, vector<1x8x8xf32> -> vector<8x8x8xf32>
    "tpu.trace_start"() <{level = 10 : i32, message = "bqd,bkd->bqk"}> : () -> ()
    %cst_45 = arith.constant dense<0.000000e+00> : vector<8x8x8xf32>
    %269 = tpu.matmul %234, %251, %cst_45 {dimension_numbers = #tpu.dot_dimension_numbers<[2], [2], [1], [1], [0, 0, 0, 1, 1, 1], [0], [0]>} : vector<8x8x8xf32>, vector<8x8x8xf32>, vector<8x8x8xf32> -> vector<8x8x8xf32>
    "tpu.trace_stop"() : () -> ()
    %cst_46 = arith.constant dense<0xFF800000> : vector<8x8xf32>
    %270 = vector.multi_reduction <maximumf>, %269, %cst_46 [2] : vector<8x8x8xf32> to vector<8x8xf32>
    %271 = vector.shape_cast %270 : vector<8x8xf32> to vector<8x8x1xf32>
    %272 = vector.broadcast %271 : vector<8x8x1xf32> to vector<8x8x8xf32>
    %273 = arith.subf %269, %272 : vector<8x8x8xf32>
    %274 = math.exp %273 : vector<8x8x8xf32>
    %cst_47 = arith.constant dense<0.000000e+00> : vector<8x8xf32>
    %275 = vector.multi_reduction <add>, %274, %cst_47 [2] : vector<8x8x8xf32> to vector<8x8xf32>
    %276 = vector.shape_cast %275 : vector<8x8xf32> to vector<8x8x1xf32>
    %277 = tpu.reciprocal %276 {approx = true} : vector<8x8x1xf32> -> vector<8x8x1xf32>
    %278 = vector.broadcast %277 : vector<8x8x1xf32> to vector<8x8x8xf32>
    %279 = arith.mulf %274, %278 : vector<8x8x8xf32>
    "tpu.trace_start"() <{level = 10 : i32, message = "bqk,bkd->bqd"}> : () -> ()
    %cst_48 = arith.constant dense<0.000000e+00> : vector<8x8x8xf32>
    %280 = tpu.matmul %279, %268, %cst_48 {dimension_numbers = #tpu.dot_dimension_numbers<[2], [1], [1], [2], [0, 0, 0, 1, 1, 2], [0], [0]>} : vector<8x8x8xf32>, vector<8x8x8xf32>, vector<8x8x8xf32> -> vector<8x8x8xf32>
    "tpu.trace_stop"() : () -> ()
    %281 = vector.extract_strided_slice %280 {offsets = [0, 0, 0], sizes = [1, 8, 8], strides = [1, 1, 1]} : vector<8x8x8xf32> to vector<1x8x8xf32>
    %282 = vector.shape_cast %281 : vector<1x8x8xf32> to vector<8x8xf32>
    %283 = vector.extract_strided_slice %280 {offsets = [1, 0, 0], sizes = [1, 8, 8], strides = [1, 1, 1]} : vector<8x8x8xf32> to vector<1x8x8xf32>
    %284 = vector.shape_cast %283 : vector<1x8x8xf32> to vector<8x8xf32>
    %285 = vector.extract_strided_slice %280 {offsets = [2, 0, 0], sizes = [1, 8, 8], strides = [1, 1, 1]} : vector<8x8x8xf32> to vector<1x8x8xf32>
    %286 = vector.shape_cast %285 : vector<1x8x8xf32> to vector<8x8xf32>
    %287 = vector.extract_strided_slice %280 {offsets = [3, 0, 0], sizes = [1, 8, 8], strides = [1, 1, 1]} : vector<8x8x8xf32> to vector<1x8x8xf32>
    %288 = vector.shape_cast %287 : vector<1x8x8xf32> to vector<8x8xf32>
    %289 = tpu.concatenate %282, %284, %286, %288 in 1 : vector<8x8xf32>, vector<8x8xf32>, vector<8x8xf32>, vector<8x8xf32> -> vector<8x32xf32>
    %290 = vector.extract_strided_slice %280 {offsets = [4, 0, 0], sizes = [1, 8, 8], strides = [1, 1, 1]} : vector<8x8x8xf32> to vector<1x8x8xf32>
    %291 = vector.shape_cast %290 : vector<1x8x8xf32> to vector<8x8xf32>
    %292 = vector.extract_strided_slice %280 {offsets = [5, 0, 0], sizes = [1, 8, 8], strides = [1, 1, 1]} : vector<8x8x8xf32> to vector<1x8x8xf32>
    %293 = vector.shape_cast %292 : vector<1x8x8xf32> to vector<8x8xf32>
    %294 = vector.extract_strided_slice %280 {offsets = [6, 0, 0], sizes = [1, 8, 8], strides = [1, 1, 1]} : vector<8x8x8xf32> to vector<1x8x8xf32>
    %295 = vector.shape_cast %294 : vector<1x8x8xf32> to vector<8x8xf32>
    %296 = vector.extract_strided_slice %280 {offsets = [7, 0, 0], sizes = [1, 8, 8], strides = [1, 1, 1]} : vector<8x8x8xf32> to vector<1x8x8xf32>
    %297 = vector.shape_cast %296 : vector<1x8x8xf32> to vector<8x8xf32>
    %298 = tpu.concatenate %291, %293, %295, %297 in 1 : vector<8x8xf32>, vector<8x8xf32>, vector<8x8xf32>, vector<8x8xf32> -> vector<8x32xf32>
    %299 = tpu.concatenate %289, %298 in 0 : vector<8x32xf32>, vector<8x32xf32> -> vector<16x32xf32>
    %cst_49 = arith.constant dense<0.000000e+00> : vector<16x32xf32>
    %300 = tpu.matmul %299, %178, %cst_49 {dimension_numbers = #tpu.dot_dimension_numbers<[1], [0], [0], [1], [0, 0, 1, 1], [], []>} : vector<16x32xf32>, vector<32x32xf32>, vector<16x32xf32> -> vector<16x32xf32>
    %301 = vector.broadcast %185 : vector<1x32xf32> to vector<16x32xf32>
    %302 = arith.addf %300, %301 : vector<16x32xf32>
    %303 = arith.addf %170, %302 : vector<16x32xf32>
    %cst_50 = arith.constant dense<0.000000e+00> : vector<16xf32>
    %304 = vector.multi_reduction <add>, %303, %cst_50 [1] : vector<16x32xf32> to vector<16xf32>
    %305 = vector.shape_cast %304 : vector<16xf32> to vector<16x1xf32>
    %cst_51 = arith.constant 3.200000e+01 : f32
    %306 = vector.broadcast %cst_51 : f32 to vector<16x1xf32>
    %307 = arith.divf %305, %306 : vector<16x1xf32>
    %308 = vector.broadcast %307 : vector<16x1xf32> to vector<16x32xf32>
    %309 = arith.subf %303, %308 : vector<16x32xf32>
    %310 = arith.mulf %309, %309 : vector<16x32xf32>
    %cst_52 = arith.constant dense<0.000000e+00> : vector<16xf32>
    %311 = vector.multi_reduction <add>, %310, %cst_52 [1] : vector<16x32xf32> to vector<16xf32>
    %312 = vector.shape_cast %311 : vector<16xf32> to vector<16x1xf32>
    %cst_53 = arith.constant 3.200000e+01 : f32
    %313 = vector.broadcast %cst_53 : f32 to vector<16x1xf32>
    %314 = arith.divf %312, %313 : vector<16x1xf32>
    %315 = vector.broadcast %307 : vector<16x1xf32> to vector<16x32xf32>
    %316 = arith.subf %303, %315 : vector<16x32xf32>
    %cst_54 = arith.constant 9.99999997E-7 : f32
    %317 = vector.broadcast %cst_54 : f32 to vector<16x1xf32>
    %318 = arith.addf %314, %317 : vector<16x1xf32>
    %319 = math.rsqrt %318 : vector<16x1xf32>
    %320 = vector.broadcast %319 : vector<16x1xf32> to vector<16x32xf32>
    %321 = arith.mulf %316, %320 : vector<16x32xf32>
    %322 = vector.broadcast %182 : vector<1x32xf32> to vector<16x32xf32>
    %323 = arith.mulf %321, %322 : vector<16x32xf32>
    %324 = vector.broadcast %183 : vector<1x32xf32> to vector<16x32xf32>
    %325 = arith.addf %323, %324 : vector<16x32xf32>
    %cst_55 = arith.constant dense<0.000000e+00> : vector<16x128xf32>
    %326 = tpu.matmul %325, %179, %cst_55 {dimension_numbers = #tpu.dot_dimension_numbers<[1], [0], [0], [1], [0, 0, 1, 1], [], []>} : vector<16x32xf32>, vector<32x128xf32>, vector<16x128xf32> -> vector<16x128xf32>
    %327 = vector.broadcast %186 : vector<1x128xf32> to vector<16x128xf32>
    %328 = arith.addf %326, %327 : vector<16x128xf32>
    %cst_56 = arith.constant 1.702000e+00 : f32
    %329 = vector.broadcast %cst_56 : f32 to vector<16x128xf32>
    %330 = arith.mulf %329, %328 : vector<16x128xf32>
    %331 = arith.negf %330 : vector<16x128xf32>
    %332 = math.exp %331 : vector<16x128xf32>
    %cst_57 = arith.constant 1.000000e+00 : f32
    %333 = vector.broadcast %cst_57 : f32 to vector<16x128xf32>
    %334 = arith.addf %333, %332 : vector<16x128xf32>
    %335 = arith.divf %333, %334 : vector<16x128xf32>
    %336 = arith.mulf %328, %335 : vector<16x128xf32>
    %cst_58 = arith.constant dense<0.000000e+00> : vector<16x32xf32>
    %337 = tpu.matmul %336, %174, %cst_58 {dimension_numbers = #tpu.dot_dimension_numbers<[1], [0], [0], [1], [0, 0, 1, 1], [], []>} : vector<16x128xf32>, vector<128x32xf32>, vector<16x32xf32> -> vector<16x32xf32>
    %338 = vector.broadcast %187 : vector<1x32xf32> to vector<16x32xf32>
    %339 = arith.addf %337, %338 : vector<16x32xf32>
    %340 = arith.addf %303, %339 : vector<16x32xf32>
    %c0_59 = arith.constant 0 : index
    %c0_60 = arith.constant 0 : index
    %341 = vector.load %arg4[%c0_59, %c0_60] : memref<16x32xf32, #tpu.memory_space<vmem>>, vector<16x32xf32>
    tpu.vector_store %arg4[%c0_59, %c0_60], %340 {strides = array<i32>} : memref<16x32xf32, #tpu.memory_space<vmem>>, vector<16x32xf32>,
    return
  }
}

</mosaic_0001>

<bundles_post_ra>
// kernel: vit_encoder.1
= control target key start
LH: loop header
LB: loop body
LE: loop exit
PB: predicated region body
PF: predicated region fallthrough
CT: control target
= control target key end

     0   :  { %vm45_vm0 = vcmask 261120   ;;  %s2706_s0 = inlined_call_operand.vmem [shape: f32[16,32], index: 0, kind: input, shape index: {}]   ;;  %s2707_s1 = inlined_call_operand.vmem [shape: f32[2,32,256], index: 1, kind: input, shape index: {}]   ;;  %s2708_s2 = inlined_call_operand.vmem [shape: f32[2,128,32], index: 2, kind: input, shape index: {}]   ;;  %s2709_s3 = inlined_call_operand.vmem [shape: f32[2,8,128], index: 3, kind: input, shape index: {}]   ;;  %s2710_s4 = inlined_call_operand.hbm [shape: f32[16,32], index: 4, kind: output, shape index: {}]  }
   0x1   :  { %v2099_v0 = vld [vmem:[%s2706_s0] sm:$0xff] }
   0x2   :  { %9 = vsyncpa [#allocation3], 0  ;;  %v46_v1 = vsel %vm45_vm0, %v2099_v0, 0.0  ;;  %v2106_v2 = vld [vmem:[%s2706_s0 + $0x8] sm:$0xff]  ;;  %v2059_v4 = vmov 32.0   ;;  %v2121_v21 = vld [vmem:[%s2707_s1 + $0x30] sm:$0xff] }
   0x3   :  { %47 = vadd.xlane.f32.xlu0 %v46_v1  ;;  %v49_v3 = vsel %vm45_vm0, %v2106_v2, 0.0  ;;  %1935 = vrcp.f32 %v2059_v4  ;;  %122 = vmatpush.msra.mxu1 %v2121_v21  ;;  %v2127_v22 = vld [vmem:[%s2707_s1 + $0x20] sm:$0xff]  ;;  %v2133_v23 = vld [vmem:[%s2707_s1 + $0x10] sm:$0xff]  ;;  %s2060_s28 = smov 104   ;;  %s2061_s29 = smov 120   ;;  %vm165_vm8 = vcmask 64512  }
   0x4   :  { %v2139_v24 = vld [vmem:[%s2707_s1] sm:$0xff]  ;;  %v1900_v25 = vpack.i.bf16 %v2127_v22, %v2121_v21  ;;  %s2062_s30 = smov 112   ;;  %s2063_s5 = smov 96   ;;  %vm681_vm9 = vcmask 130048   ;;  %vm683_vm10 = vcmask 195584  }
   0x5   :  { %123 = vmatpush.msra.mxu1 %v2127_v22  ;;  %v1905_v26 = vpack.i.bf16 %v2139_v24, %v2133_v23  ;;  %v2151_v38 = vld [vmem:[%s2709_s3] sm:$0xff]  ;;  %s2064_s6 = smov 64   ;;  %s2065_s7 = smov 32  }
   0x6   :  { %v97_v42 = vperm.slane %v2151_v38, 0  ;;  %v100_v46 = vperm.slane %v2151_v38, 1  ;;  %v103_v56 = vperm.slane %v2151_v38, 4  ;;  %s2066_s8 = smov 8   ;;  %s2067_s9 = smov 24  }
   0x7   :  { %124 = vmatpush.msra.mxu1 %v2133_v23  ;;  %s2068_s10 = smov 16   ;;  %s1772_s27 = sshll.u32 %s2710_s4, 4  ;;  %s1773_s27 = int_to_ptr.hbm [resolvable:$true] %s1772_s27 }
   0x8   :  { %s2069_s11 = smov [#allocation2]   ;;  %s2070_s13 = smov 128  }
   0x9   :  { %v1936_v5 = vpop.eup %1935  ;;  %125 = vmatpush.msra.mxu1 %v2139_v24  ;;  %s1770_s12 = sshll.u32 %s2069_s11, 4  ;;  %s1771_s12 = int_to_ptr.vmem [resolvable:$true] %s1770_s12 }
   0xa   :  { %v53_v6 = vmul.f32 32.0, %v1936_v5  ;;  %vm57_vm1 = vweird.f32 %v1936_v5 }
   0xb   :  { %50 = vadd.xlane.f32.xlu0 %v49_v3 }
   0xc   :  { %v54_v7 = vsub.f32 1.0, %v53_v6 }
   0xe   :  { %v55_v8 = vmul.f32 %v1936_v5, %v54_v7 }
  0x10   :  { %v56_v9 = vadd.f32 %v1936_v5, %v55_v8 }
  0x12   :  { %v2110_v10 = vsel %vm57_vm1, %v1936_v5, %v56_v9 }
  0x76   :  { %v48_v11 = vpop.xlane.xlu0 %47 }
  0x77   :  { %v59_v12 = vmul.f32 %v2110_v10, %v48_v11 }
  0x79   :  { %v61_v13 = vsub.f32 %v2099_v0, %v59_v12 }
  0x7b   :  { %v63_v14 = vmul.f32 %v61_v13, %v61_v13 }
  0x7d   :  { %v65_v15 = vsel %vm45_vm0, %v63_v14, 0.0 }
  0x7e   :  { %66 = vadd.xlane.f32.xlu1 %v65_v15  ;;  %v51_v16 = vpop.xlane.xlu0 %50 }
  0x7f   :  { %v60_v17 = vmul.f32 %v2110_v10, %v51_v16 }
  0x81   :  { %v62_v18 = vsub.f32 %v2106_v2, %v60_v17 }
  0x83   :  { %v64_v19 = vmul.f32 %v62_v18, %v62_v18 }
  0x85   :  { %v68_v20 = vsel %vm45_vm0, %v64_v19, 0.0 }
  0x86   :  { %69 = vadd.xlane.f32.xlu1 %v68_v20 }
  0xf1   :  { %v67_v27 = vpop.xlane.xlu1 %66 }
  0xf2   :  { %v71_v28 = vmul.f32 %v67_v27, %v2110_v10 }
  0xf4   :  { %v73_v29 = vadd.f32 1e-06, %v71_v28 }
  0xf6   :  { %1937 = vrsqrt.f32 %v73_v29  ;;  %vm81_vm3 = vweird.f32 %v73_v29 }
  0xf9   :  { %v70_v30 = vpop.xlane.xlu1 %69 }
  0xfa   :  { %v72_v31 = vmul.f32 %v70_v30, %v2110_v10 }
  0xfc   :  { %v1938_v32 = vpop.eup %1937  ;;  %v74_v33 = vadd.f32 1e-06, %v72_v31 }
  0xfd   :  { %v76_v34 = vmul.f32 %v1938_v32, %v73_v29  ;;  %vm82_vm2 = vweird.f32 %v1938_v32 }
  0xfe   :  { %1939 = vrsqrt.f32 %v74_v33  ;;  %vm83_vm4 = vmor %vm81_vm3, %vm82_vm2  ;;  %vm91_vm6 = vweird.f32 %v74_v33 }
  0xff   :  { %v77_v35 = vmul.f32 %v1938_v32, %v76_v34 }
 0x101   :  { %v78_v36 = vmul.f32 0.5, %v77_v35 }
 0x103   :  { %v79_v37 = vsub.f32 1.5, %v78_v36 }
 0x104   :  { %v1940_v39 = vpop.eup %1939 }
 0x105   :  { %v80_v40 = vmul.f32 %v1938_v32, %v79_v37  ;;  %v86_v41 = vmul.f32 %v1940_v39, %v74_v33  ;;  %vm92_vm5 = vweird.f32 %v1940_v39 }
 0x106   :  { %vm93_vm7 = vmor %vm91_vm6, %vm92_vm5 }
 0x107   :  { %v84_v43 = vsel %vm83_vm4, %v1938_v32, %v80_v40  ;;  %v87_v44 = vmul.f32 %v1940_v39, %v86_v41 }
 0x108   :  { %v95_v45 = vmul.f32 %v84_v43, %v61_v13 }
 0x109   :  { %v88_v47 = vmul.f32 0.5, %v87_v44 }
 0x10a   :  { %v98_v48 = vmul.f32 %v97_v42, %v95_v45 }
 0x10b   :  { %v89_v49 = vsub.f32 1.5, %v88_v47 }
 0x10c   :  { %v101_v50 = vadd.f32 %v100_v46, %v98_v48 }
 0x10d   :  { %v90_v51 = vmul.f32 %v1940_v39, %v89_v49 }
 0x10e   :  { %1784 = vmatmul.msk.f32.vlgmr.msra.gmra.mxu1 %vm45_vm0, %v101_v50 }
 0x10f   :  { %v94_v52 = vsel %vm93_vm7, %v1940_v39, %v90_v51 }
 0x110   :  { %v96_v53 = vmul.f32 %v94_v52, %v62_v18 }
 0x112   :  { %v99_v54 = vmul.f32 %v97_v42, %v96_v53 }
 0x114   :  { %v102_v55 = vadd.f32 %v100_v46, %v99_v54 }
 0x116   :  { %1785 = vmatmul.msk.f32.gmra.mxu1 %vm45_vm0, %v102_v55 }
 0x18b   :  { %v127_v57 = vpop.f32.mrf.mxu1 }
 0x18c   :  { %v2158_v58 = vadd.f32 %v127_v57, %v103_v56 }
 0x18e   :  { %154 = vrot.lane.b32.xlu0 %v2158_v58, %s2060_s28  ;;  %150 = vrot.lane.b32.xlu2 %v2158_v58, %s2061_s29  ;;  %v133_v61 = vmul.f32 0.35355338, %v2158_v58 }
 0x193   :  { %v130_v59 = vpop.f32.mrf.mxu1 }
 0x194   :  { %v2164_v60 = vadd.f32 %v130_v59, %v103_v56 }
 0x196   :  { %152 = vrot.lane.b32.xlu2 %v2158_v58, %s2062_s30  ;;  %161 = vrot.lane.b32.xlu1 %v2164_v60, %s2060_s28  ;;  %v134_v62 = vmul.f32 0.35355338, %v2164_v60 }
 0x19e   :  { %157 = vrot.lane.b32.xlu2 %v2164_v60, %s2061_s29  ;;  %268 = vrot.lane.b32.xlu1 %v2164_v60, %s2063_s5 }
 0x1a6   :  { %159 = vrot.lane.b32.xlu2 %v2164_v60, %s2062_s30  ;;  %138 = vrot.lane.b32.xlu1 %v133_v61, %s2062_s30 }
 0x1ae   :  { %163 = vrot.lane.b32.xlu2 %v2158_v58, %s2063_s5  ;;  %147 = vrot.lane.b32.xlu1 %v134_v62, %s2060_s28 }
 0x1b6   :  { %136 = vrot.lane.b32.xlu2 %v133_v61, %s2061_s29 }
 0x1e8   :  { %v2183_v63 = vpop.permute.xlu2 %150 }
 0x1e9   :  { %190 = vrot.lane.b32.xlu0 %v2183_v63, %s2063_s5 }
 0x1f0   :  { %v2187_v1 = vpop.permute.xlu2 %152 }
 0x1f1   :  { %216 = vrot.lane.b32.xlu0 %v2187_v1, %s2063_s5 }
 0x1f8   :  { %v2191_v3 = vpop.permute.xlu2 %157 }
 0x200   :  { %v2193_v4 = vpop.permute.xlu2 %159  ;;  %v2195_v5 = vpop.permute.xlu0 %154 }
 0x201   :  { %v1895_v6 = vpack.i.bf16 %v2193_v4, %v2191_v3  ;;  %320 = vrot.lane.b32.xlu1 %v2193_v4, %s2063_s5  ;;  %242 = vrot.lane.b32.xlu2 %v2195_v5, %s2063_s5 }
 0x208   :  { %v164_v7 = vpop.permute.xlu2 %163  ;;  %v162_v8 = vpop.permute.xlu1 %161 }
 0x209   :  { %v1890_v9 = vpack.i.bf16 %v162_v8, %v2187_v1  ;;  %1786 = vmatpush.xpose.msk.msra.mxu2 %vm165_vm8, %v164_v7  ;;  %346 = vrot.lane.b32.xlu0 %v162_v8, %s2063_s5  ;;  %v1885_v7 = vpack.i.bf16 %v2183_v63, %v2195_v5 }
 0x20a   :  { %140 = vrot.lane.b32.xlu2 %v133_v61, %s2060_s28 }
 0x20c   :  { %1787 = vmatmul.msk.f32.vlgmr.msra.gmra.mxu2 %vm165_vm8, %v133_v61 }
 0x210   :  { %v137_v11 = vpop.permute.xlu2 %136  ;;  %v269_v12 = vpop.permute.xlu1 %268 }
 0x211   :  { %294 = vrot.lane.b32.xlu0 %v2191_v3, %s2063_s5 }
 0x212   :  { %143 = vrot.lane.b32.xlu2 %v134_v62, %s2061_s29 }
 0x218   :  { %v139_v15 = vpop.permute.xlu1 %138 }
 0x219   :  { %145 = vrot.lane.b32.xlu0 %v134_v62, %s2062_s30 }
 0x220   :  { %v148_v18 = vpop.permute.xlu1 %147 }
 0x25b   :  { %v243_v13 = vpop.permute.xlu2 %242  ;;  %v191_v14 = vpop.permute.xlu0 %190 }
 0x25c   :  { %1788 = vmatpush.xpose.msk.msrb.mxu2 %vm165_vm8, %v191_v14  ;;  %1792 = vmatpush.xpose.msk.msrb.mxu1 %vm165_vm8, %v243_v13 }
 0x25f   :  { %1789 = vmatmul.msk.f32.vlgmr.msrb.gmra.mxu2 %vm165_vm8, %v137_v11 }
 0x260   :  { %1794 = vmatpush.xpose.msk.msra.mxu2 %vm165_vm8, %v269_v12 }
 0x263   :  { %v217_v16 = vpop.permute.xlu0 %216 }
 0x264   :  { %v141_v17 = vpop.permute.xlu2 %140  ;;  %1790 = vmatpush.xpose.msk.msra.mxu3 %vm165_vm8, %v217_v16 }
 0x265   :  { %1793 = vmatmul.msk.f32.vlgmr.msrb.gmra.mxu1 %vm165_vm8, %v141_v17 }
 0x267   :  { %1791 = vmatmul.msk.f32.vlgmr.msra.gmra.mxu3 %vm165_vm8, %v139_v15  ;;  %1795 = vmatmul.msk.f32.vlgmr.msra.gmra.mxu2 %vm165_vm8, %v134_v62 }
 0x26c   :  { %v144_v28 = vpop.permute.xlu2 %143 }
 0x273   :  { %v321_v19 = vpop.permute.xlu1 %320 }
 0x274   :  { %1798 = vmatpush.xpose.msk.msra.mxu1 %vm165_vm8, %v321_v19 }
 0x27b   :  { %v347_v20 = vpop.permute.xlu0 %346 }
 0x27c   :  { %1800 = vmatpush.xpose.msk.msrb.mxu2 %vm165_vm8, %v347_v20 }
 0x27f   :  { %1801 = vmatmul.msk.f32.vlgmr.msrb.gmra.mxu2 %vm165_vm8, %v148_v18 }
 0x283   :  { %v295_v27 = vpop.permute.xlu0 %294 }
 0x284   :  { %1796 = vmatpush.xpose.msk.msrb.mxu3 %vm165_vm8, %v295_v27 }
 0x287   :  { %1797 = vmatmul.msk.f32.vlgmr.msrb.gmra.mxu3 %vm165_vm8, %v144_v28 }
 0x28b   :  { %v146_v29 = vpop.permute.xlu0 %145 }
 0x28c   :  { %1799 = vmatmul.msk.f32.vlgmr.msra.gmra.mxu1 %vm165_vm8, %v146_v29 }
 0x28f   :  { %v2226_v30 = vpop.f32.mrf.mxu2 }
 0x290   :  { %v372_v44 = vsel %vm165_vm8, %v2226_v30, -inf }
 0x2e2   :  { %v265_v31 = vpop.f32.mrf.mxu1  ;;  %v213_v32 = vpop.f32.mrf.mxu2 }
 0x2e3   :  { %v381_v33 = vsel %vm165_vm8, %v265_v31, -inf  ;;  %v375_v34 = vsel %vm165_vm8, %v213_v32, -inf }
 0x2e4   :  { %382 = vmax.xlane.f32.xlu2 %v381_v33  ;;  %376 = vmax.xlane.f32.xlu1 %v375_v34 }
 0x2ea   :  { %v239_v35 = vpop.f32.mrf.mxu3  ;;  %v2231_v37 = vpop.f32.mrf.mxu2 }
 0x2eb   :  { %v378_v36 = vsel %vm165_vm8, %v239_v35, -inf  ;;  %v384_v46 = vsel %vm165_vm8, %v2231_v37, -inf }
 0x2ec   :  { %379 = vmax.xlane.f32.xlu0 %v378_v36 }
 0x302   :  { %v369_v39 = vpop.f32.mrf.mxu2 }
 0x303   :  { %v393_v40 = vsel %vm165_vm8, %v369_v39, -inf }
 0x304   :  { %394 = vmax.xlane.f32.xlu2 %v393_v40 }
 0x309   :  { %v343_v41 = vpop.f32.mrf.mxu1 }
 0x30a   :  { %v317_v42 = vpop.f32.mrf.mxu3  ;;  %v390_v43 = vsel %vm165_vm8, %v343_v41, -inf }
 0x30b   :  { %391 = vmax.xlane.f32.xlu0 %v390_v43  ;;  %v387_v45 = vsel %vm165_vm8, %v317_v42, -inf }
 0x30c   :  { %373 = vmax.xlane.f32.xlu2 %v372_v44  ;;  %388 = vmax.xlane.f32.xlu1 %v387_v45 }
 0x314   :  { %385 = vmax.xlane.f32.xlu1 %v384_v46 }
 0x32d   :  { %1891 = vrot.lane.b32.xlu1 %v1890_v9, %s2064_s6 }
 0x357   :  { %v383_v47 = vpop.xlane.xlu2 %382  ;;  %v377_v48 = vpop.xlane.xlu1 %376 }
 0x358   :  { %v399_v49 = vsub.f32 %v265_v31, %v383_v47  ;;  %v397_v50 = vsub.f32 %v213_v32, %v377_v48 }
 0x35a   :  { %v410_v51 = vmul.f32 1.442695, %v399_v49  ;;  %v406_v52 = vmul.f32 1.442695, %v397_v50 }
 0x35c   :  { %1941 = vpow2.f32 %v410_v51 }
 0x35d   :  { %1943 = vpow2.f32 %v406_v52 }
 0x35f   :  { %v380_v53 = vpop.xlane.xlu0 %379 }
 0x360   :  { %v398_v54 = vsub.f32 %v239_v35, %v380_v53 }
 0x362   :  { %v2241_v55 = vpop.eup %1941  ;;  %v408_v56 = vmul.f32 1.442695, %v398_v54 }
 0x363   :  { %v2243_v57 = vpop.eup %1943  ;;  %v429_v59 = vsel %vm165_vm8, %v2241_v55, 0.0 }
 0x364   :  { %1945 = vpow2.f32 %v408_v56  ;;  %430 = vadd.xlane.f32.xlu0 %v429_v59  ;;  %v423_v61 = vsel %vm165_vm8, %v2243_v57, 0.0 }
 0x365   :  { %424 = vadd.xlane.f32.xlu2 %v423_v61 }
 0x36a   :  { %v2249_v62 = vpop.eup %1945 }
 0x36b   :  { %v426_v1 = vsel %vm165_vm8, %v2249_v62, 0.0 }
 0x36c   :  { %427 = vadd.xlane.f32.xlu1 %v426_v1 }
 0x377   :  { %v395_v8 = vpop.xlane.xlu2 %394 }
 0x378   :  { %v403_v14 = vsub.f32 %v369_v39, %v395_v8 }
 0x37a   :  { %v418_v17 = vmul.f32 1.442695, %v403_v14 }
 0x37d   :  { %1886 = vrot.lane.b32.xlu2 %v1885_v7, %s2064_s6 }
 0x37e   :  { %v392_v9 = vpop.xlane.xlu0 %391 }
 0x37f   :  { %v402_v11 = vsub.f32 %v343_v41, %v392_v9  ;;  %v389_v12 = vpop.xlane.xlu1 %388  ;;  %v374_v27 = vpop.xlane.xlu2 %373 }
 0x380   :  { %v401_v13 = vsub.f32 %v317_v42, %v389_v12  ;;  %v396_v29 = vsub.f32 %v2226_v30, %v374_v27 }
 0x381   :  { %v416_v15 = vmul.f32 1.442695, %v402_v11 }
 0x382   :  { %v414_v16 = vmul.f32 1.442695, %v401_v13  ;;  %v404_v32 = vmul.f32 1.442695, %v396_v29 }
 0x383   :  { %1947 = vpow2.f32 %v416_v15 }
 0x384   :  { %1949 = vpow2.f32 %v414_v16 }
 0x385   :  { %1951 = vpow2.f32 %v418_v17 }
 0x386   :  { %1953 = vpow2.f32 %v404_v32 }
 0x387   :  { %v386_v31 = vpop.xlane.xlu1 %385 }
 0x388   :  { %v400_v30 = vsub.f32 %v2231_v37, %v386_v31 }
 0x389   :  { %v2256_v18 = vpop.eup %1947 }
 0x38a   :  { %v438_v19 = vsel %vm165_vm8, %v2256_v18, 0.0  ;;  %v2260_v63 = vpop.eup %1949  ;;  %v412_v39 = vmul.f32 1.442695, %v400_v30 }
 0x38b   :  { %439 = vadd.xlane.f32.xlu0 %v438_v19  ;;  %v435_v5 = vsel %vm165_vm8, %v2260_v63, 0.0  ;;  %v1952_v20 = vpop.eup %1951 }
 0x38c   :  { %436 = vadd.xlane.f32.xlu1 %v435_v5  ;;  %v441_v28 = vsel %vm165_vm8, %v1952_v20, 0.0  ;;  %v2266_v35 = vpop.eup %1953  ;;  %1955 = vpow2.f32 %v412_v39 }
 0x38d   :  { %v420_v36 = vsel %vm165_vm8, %v2266_v35, 0.0 }
 0x392   :  { %v1956_v40 = vpop.eup %1955 }
 0x393   :  { %442 = vadd.xlane.f32.xlu0 %v441_v28 }
 0x39f   :  { %v1892_v33 = vpop.permute.xlu1 %1891 }
 0x3a0   :  { %v1893_v34 = vunpack.i.l.bf16 %v1892_v33  ;;  %v1894_v23 = vunpack.i.h.bf16 %v1892_v33 }
 0x3a2   :  { %533 = vmatpush.msrb.mxu1 %v1893_v34 }
 0x3a5   :  { %460 = vrot.lane.b32.xlu1 %v2158_v58, %s2064_s6  ;;  %v432_v58 = vsel %vm165_vm8, %v1956_v40, 0.0 }
 0x3a6   :  { %421 = vadd.xlane.f32.xlu2 %v420_v36 }
 0x3a7   :  { %1896 = vrot.lane.b32.xlu0 %v1895_v6, %s2064_s6 }
 0x3ad   :  { %564 = vrot.lane.b32.xlu1 %v2164_v60, %s2064_s6 }
 0x3b5   :  { %1901 = vrot.lane.b32.xlu1 %v1900_v25, %s2065_s7 }
 0x3be   :  { %1906 = vrot.lane.b32.xlu2 %v1905_v26, %s2065_s7 }
 0x3d1   :  { %433 = vadd.xlane.f32.xlu0 %v432_v58  ;;  %v700_v58 = vperm.slane %v2151_v38, 5 }
 0x3d7   :  { %v431_v60 = vpop.xlane.xlu0 %430 }
 0x3d8   :  { %1957 = vrcp.f32 %v431_v60  ;;  %v425_v3 = vpop.xlane.xlu2 %424 }
 0x3d9   :  { %1959 = vrcp.f32 %v425_v3 }
 0x3de   :  { %v1958_v4 = vpop.eup %1957 }
 0x3df   :  { %v1960_v6 = vpop.eup %1959  ;;  %v428_v37 = vpop.xlane.xlu1 %427  ;;  %v455_v22 = vmul.f32 %v1958_v4, %v2241_v55 }
 0x3e0   :  { %v1887_v41 = vpop.permute.xlu2 %1886  ;;  %1961 = vrcp.f32 %v428_v37  ;;  %v453_v25 = vmul.f32 %v1960_v6, %v2243_v57 }
 0x3e1   :  { %v1888_v42 = vunpack.i.l.bf16 %v1887_v41  ;;  %v1889_v21 = vunpack.i.h.bf16 %v1887_v41 }
 0x3e3   :  { %507 = vmatpush.msra.mxu0 %v1889_v21  ;;  %559 = vmatpush.msra.mxu2 %v1888_v42 }
 0x3e4   :  { %1803 = vmatmul.msk.f32.vlgmr.msra.gmra.mxu0 %vm165_vm8, %v453_v25  ;;  %1805 = vmatmul.msk.f32.vlgmr.msra.gmra.mxu2 %vm165_vm8, %v455_v22 }
 0x3e5   :  { %663 = vmatpush.msrb.mxu2 %v1894_v23 }
 0x3e6   :  { %v1962_v24 = vpop.eup %1961 }
 0x3e7   :  { %v454_v26 = vmul.f32 %v1962_v24, %v2249_v62 }
 0x3e9   :  { %1804 = vmatmul.msk.f32.vlgmr.msrb.gmra.mxu1 %vm165_vm8, %v454_v26 }
 0x3fe   :  { %v440_v43 = vpop.xlane.xlu0 %439 }
 0x3ff   :  { %v437_v47 = vpop.xlane.xlu1 %436 }
 0x406   :  { %v443_v44 = vpop.xlane.xlu0 %442 }
 0x407   :  { %1963 = vrcp.f32 %v443_v44 }
 0x408   :  { %1965 = vrcp.f32 %v440_v43 }
 0x409   :  { %1967 = vrcp.f32 %v437_v47  ;;  %v25_v47 = vld [vmem:[%s2707_s1 + $0x28] sm:$0xff] }
 0x40d   :  { %v1964_v45 = vpop.eup %1963 }
 0x40e   :  { %v459_v46 = vmul.f32 %v1964_v45, %v1952_v20  ;;  %v1966_v48 = vpop.eup %1965 }
 0x40f   :  { %v1968_v49 = vpop.eup %1967  ;;  %v458_v55 = vmul.f32 %v1966_v48, %v2256_v18  ;;  %v23_v48 = vld [vmem:[%s2707_s1 + $0x18] sm:$0xff] }
 0x410   :  { %1809 = vmatmul.msk.f32.vlgmr.msrb.gmra.mxu2 %vm165_vm8, %v459_v46  ;;  %v457_v56 = vmul.f32 %v1968_v49, %v2260_v63  ;;  %v27_v46 = vld [vmem:[%s2707_s1 + $0x38] sm:$0xff]  ;;  %v21_v49 = vld [vmem:[%s2707_s1 + $0x8] sm:$0xff] }
 0x417   :  { %v461_v50 = vpop.permute.xlu1 %460 }
 0x418   :  { %481 = vmatpush.msra.mxu3 %v461_v50 }
 0x419   :  { %v422_v51 = vpop.xlane.xlu2 %421  ;;  %v1897_v52 = vpop.permute.xlu0 %1896 }
 0x41a   :  { %1969 = vrcp.f32 %v422_v51  ;;  %v1899_v53 = vunpack.i.h.bf16 %v1897_v52  ;;  %v1898_v54 = vunpack.i.l.bf16 %v1897_v52 }
 0x41c   :  { %611 = vmatpush.msrb.mxu0 %v1898_v54  ;;  %637 = vmatpush.msra.mxu1 %v1899_v53 }
 0x41d   :  { %1807 = vmatmul.msk.f32.vlgmr.msrb.gmra.mxu0 %vm165_vm8, %v457_v56  ;;  %1808 = vmatmul.msk.f32.vlgmr.msra.gmra.mxu1 %vm165_vm8, %v458_v55 }
 0x41e   :  { %817 = vmatpush.msra.mxu0 %v27_v46 }
 0x41f   :  { %v565_v59 = vpop.permute.xlu1 %564 }
 0x420   :  { %v1970_v57 = vpop.eup %1969  ;;  %585 = vmatpush.msrb.mxu3 %v565_v59  ;;  %818 = vmatpush.msra.mxu0 %v25_v47 }
 0x421   :  { %v452_v61 = vmul.f32 %v1970_v57, %v2266_v35  ;;  %v1907_v18 = vpop.permute.xlu2 %1906 }
 0x422   :  { %v1909_v19 = vunpack.i.h.bf16 %v1907_v18  ;;  %v1908_v63 = vunpack.i.l.bf16 %v1907_v18  ;;  %819 = vmatpush.msra.mxu0 %v23_v48 }
 0x423   :  { %1802 = vmatmul.msk.f32.vlgmr.msra.gmra.mxu3 %vm165_vm8, %v452_v61  ;;  %v792_v61 = vperm.slane %v2151_v38, 2 }
 0x424   :  { %820 = vmatpush.msra.mxu0 %v21_v49 }
 0x427   :  { %v1902_v12 = vpop.permute.xlu1 %1901 }
 0x428   :  { %v1904_v13 = vunpack.i.h.bf16 %v1902_v12  ;;  %v1903_v14 = vunpack.i.l.bf16 %v1902_v12 }
 0x42a   :  { %735 = vmatpush.msra.mxu3 %v1903_v14 }
 0x42c   :  { %736 = vmatpush.msra.mxu3 %v1904_v13 }
 0x42e   :  { %737 = vmatpush.msra.mxu3 %v1908_v63 }
 0x430   :  { %738 = vmatpush.msra.mxu3 %v1909_v19 }
 0x444   :  { %v434_v62 = vpop.xlane.xlu0 %433 }
 0x445   :  { %1971 = vrcp.f32 %v434_v62 }
 0x44b   :  { %v1972_v1 = vpop.eup %1971 }
 0x44c   :  { %v456_v7 = vmul.f32 %v1972_v1, %v1956_v40 }
 0x44e   :  { %1806 = vmatmul.msk.f32.vlgmr.msrb.gmra.mxu3 %vm165_vm8, %v456_v7  ;;  %v795_v7 = vperm.slane %v2151_v38, 3 }
 0x461   :  { %v509_v8 = vpop.f32.mrf.mxu0 }
 0x462   :  { %669 = vrot.lane.b32.xlu1 %v509_v8, %s2066_s8 }
 0x466   :  { %v535_v11 = vpop.f32.mrf.mxu1 }
 0x467   :  { %v561_v9 = vpop.f32.mrf.mxu2 }
 0x468   :  { %677 = vrot.lane.b32.xlu0 %v561_v9, %s2067_s9 }
 0x46a   :  { %673 = vrot.lane.b32.xlu1 %v535_v11, %s2068_s10 }
 0x493   :  { %v665_v15 = vpop.f32.mrf.mxu2 }
 0x494   :  { %694 = vrot.lane.b32.xlu2 %v665_v15, %s2067_s9 }
 0x49a   :  { %v613_v16 = vpop.f32.mrf.mxu0  ;;  %v639_v17 = vpop.f32.mrf.mxu1 }
 0x49b   :  { %686 = vrot.lane.b32.xlu1 %v613_v16, %s2066_s8 }
 0x4a3   :  { %690 = vrot.lane.b32.xlu1 %v639_v17, %s2068_s10 }
 0x4a6   :  { %v483_v20 = vpop.f32.mrf.mxu3 }
 0x4d1   :  { %v587_v34 = vpop.f32.mrf.mxu3 }
 0x4d4   :  { %v670_v5 = vpop.permute.xlu1 %669 }
 0x4d5   :  { %v680_v27 = vsel %vm165_vm8, %v483_v20, %v670_v5 }
 0x4da   :  { %v678_v29 = vpop.permute.xlu0 %677 }
 0x4dc   :  { %v674_v28 = vpop.permute.xlu1 %673 }
 0x4dd   :  { %v682_v31 = vsel %vm681_vm9, %v680_v27, %v674_v28  ;;  %v43_v28 = vld [vmem:[%s2708_s2 + $0x78] sm:$0xff] }
 0x4de   :  { %v684_v32 = vsel %vm683_vm10, %v682_v31, %v678_v29  ;;  %871 = vmatpush.msrb.mxu1 %v43_v28  ;;  %v42_v29 = vld [vmem:[%s2708_s2 + $0x70] sm:$0xff]  ;;  %v41_v31 = vld [vmem:[%s2708_s2 + $0x68] sm:$0xff] }
 0x4df   :  { %1810 = vmatmul.msk.f32.vlgmr.msra.gmra.mxu3 %vm45_vm0, %v684_v32  ;;  %v40_v32 = vld [vmem:[%s2708_s2 + $0x60] sm:$0xff] }
 0x4e0   :  { %872 = vmatpush.msrb.mxu1 %v42_v29 }
 0x4e2   :  { %873 = vmatpush.msrb.mxu1 %v41_v31 }
 0x4e4   :  { %874 = vmatpush.msrb.mxu1 %v40_v32 }
 0x4ee   :  { %v695_v30 = vpop.permute.xlu2 %694 }
 0x50d   :  { %v687_v33 = vpop.permute.xlu1 %686 }
 0x50e   :  { %v697_v35 = vsel %vm165_vm8, %v587_v34, %v687_v33  ;;  %v39_v33 = vld [vmem:[%s2708_s2 + $0x58] sm:$0xff]  ;;  %v38_v34 = vld [vmem:[%s2708_s2 + $0x50] sm:$0xff] }
 0x50f   :  { %875 = vmatpush.msrb.mxu1 %v39_v33 }
 0x511   :  { %876 = vmatpush.msrb.mxu1 %v38_v34 }
 0x515   :  { %v691_v36 = vpop.permute.xlu1 %690 }
 0x516   :  { %v698_v39 = vsel %vm681_vm9, %v697_v35, %v691_v36  ;;  %v37_v35 = vld [vmem:[%s2708_s2 + $0x48] sm:$0xff]  ;;  %v36_v36 = vld [vmem:[%s2708_s2 + $0x40] sm:$0xff] }
 0x517   :  { %v699_v40 = vsel %vm683_vm10, %v698_v39, %v695_v30  ;;  %877 = vmatpush.msrb.mxu1 %v37_v35  ;;  %v35_v30 = vld [vmem:[%s2708_s2 + $0x38] sm:$0xff]  ;;  %v34_v39 = vld [vmem:[%s2708_s2 + $0x30] sm:$0xff] }
 0x518   :  { %1811 = vmatmul.msk.f32.gmra.mxu3 %vm45_vm0, %v699_v40  ;;  %v33_v40 = vld [vmem:[%s2708_s2 + $0x28] sm:$0xff] }
 0x519   :  { %878 = vmatpush.msrb.mxu1 %v36_v36  ;;  %v2420_v36 = vld [vmem:[%s2707_s1 + $0x70] sm:$0xff] }
 0x51a   :  { %993 = vmatpush.msra.mxu2 %v2420_v36 }
 0x51b   :  { %879 = vmatpush.msrb.mxu1 %v35_v30  ;;  %v2426_v30 = vld [vmem:[%s2707_s1 + $0x60] sm:$0xff] }
 0x51c   :  { %994 = vmatpush.msra.mxu2 %v2426_v30 }
 0x51d   :  { %880 = vmatpush.msrb.mxu1 %v34_v39  ;;  %v1925_v39 = vpack.i.bf16 %v2426_v30, %v2420_v36 }
 0x51f   :  { %881 = vmatpush.msrb.mxu1 %v33_v40  ;;  %v2434_v40 = vld [vmem:[%s2707_s1 + $0x50] sm:$0xff] }
 0x520   :  { %995 = vmatpush.msra.mxu2 %v2434_v40 }
 0x562   :  { %v740_v60 = vpop.f32.mrf.mxu3 }
 0x563   :  { %v741_v3 = vadd.f32 %v740_v60, %v700_v58  ;;  %v31_v60 = vld [vmem:[%s2708_s2 + $0x18] sm:$0xff] }
 0x565   :  { %v2318_v4 = vadd.f32 %v741_v3, %v2099_v0  ;;  %v798_v3 = vperm.slane %v2151_v38, 6 }
 0x567   :  { %v748_v6 = vsel %vm45_vm0, %v2318_v4, 0.0 }
 0x568   :  { %749 = vadd.xlane.f32.xlu1 %v748_v6  ;;  %v30_v6 = vld [vmem:[%s2708_s2 + $0x10] sm:$0xff] }
 0x59b   :  { %v743_v37 = vpop.f32.mrf.mxu3 }
 0x59c   :  { %v744_v41 = vadd.f32 %v743_v37, %v700_v58  ;;  %v32_v58 = vld [vmem:[%s2708_s2 + $0x20] sm:$0xff] }
 0x59d   :  { %882 = vmatpush.msrb.mxu1 %v32_v58  ;;  %v2439_v58 = vld [vmem:[%s2707_s1 + $0x40] sm:$0xff] }
 0x59e   :  { %v2323_v42 = vadd.f32 %v744_v41, %v2106_v2  ;;  %v29_v41 = vld [vmem:[%s2708_s2 + $0x8] sm:$0xff]  ;;  %996 = vmatpush.msra.mxu2 %v2439_v58 }
 0x59f   :  { %883 = vmatpush.msrb.mxu1 %v31_v60  ;;  %v1930_v60 = vpack.i.bf16 %v2439_v58, %v2434_v40 }
 0x5a0   :  { %v751_v21 = vsel %vm45_vm0, %v2323_v42, 0.0 }
 0x5a1   :  { %752 = vadd.xlane.f32.xlu0 %v751_v21  ;;  %884 = vmatpush.msrb.mxu1 %v30_v6 }
 0x5a3   :  { %885 = vmatpush.msrb.mxu1 %v29_v41 }
 0x5db   :  { %v750_v22 = vpop.xlane.xlu1 %749 }
 0x5dc   :  { %v754_v25 = vmul.f32 %v750_v22, %v2110_v10  ;;  %v28_v22 = vld [vmem:[%s2708_s2] sm:$0xff] }
 0x5dd   :  { %886 = vmatpush.msrb.mxu1 %v28_v22 }
 0x5de   :  { %v756_v23 = vsub.f32 %v2318_v4, %v754_v25 }
 0x5e0   :  { %v758_v0 = vmul.f32 %v756_v23, %v756_v23 }
 0x5e2   :  { %v760_v24 = vsel %vm45_vm0, %v758_v0, 0.0 }
 0x5e3   :  { %761 = vadd.xlane.f32.xlu2 %v760_v24 }
 0x614   :  { %v753_v26 = vpop.xlane.xlu0 %752 }
 0x615   :  { %v755_v43 = vmul.f32 %v753_v26, %v2110_v10 }
 0x617   :  { %v757_v44 = vsub.f32 %v2323_v42, %v755_v43 }
 0x619   :  { %v759_v2 = vmul.f32 %v757_v44, %v757_v44 }
 0x61b   :  { %v763_v45 = vsel %vm45_vm0, %v759_v2, 0.0 }
 0x61c   :  { %764 = vadd.xlane.f32.xlu1 %v763_v45 }
 0x656   :  { %v762_v50 = vpop.xlane.xlu2 %761 }
 0x657   :  { %v766_v51 = vmul.f32 %v762_v50, %v2110_v10 }
 0x659   :  { %v768_v52 = vadd.f32 1e-06, %v766_v51 }
 0x65b   :  { %1973 = vrsqrt.f32 %v768_v52  ;;  %vm776_vm12 = vweird.f32 %v768_v52 }
 0x661   :  { %v1974_v53 = vpop.eup %1973 }
 0x662   :  { %v771_v54 = vmul.f32 %v1974_v53, %v768_v52  ;;  %vm777_vm11 = vweird.f32 %v1974_v53 }
 0x663   :  { %vm778_vm13 = vmor %vm776_vm12, %vm777_vm11 }
 0x664   :  { %v772_v55 = vmul.f32 %v1974_v53, %v771_v54 }
 0x666   :  { %v773_v56 = vmul.f32 0.5, %v772_v55 }
 0x668   :  { %v774_v57 = vsub.f32 1.5, %v773_v56 }
 0x66a   :  { %v775_v59 = vmul.f32 %v1974_v53, %v774_v57 }
 0x66c   :  { %v779_v62 = vsel %vm778_vm13, %v1974_v53, %v775_v59 }
 0x66d   :  { %v790_v1 = vmul.f32 %v779_v62, %v756_v23 }
 0x66f   :  { %v793_v8 = vmul.f32 %v792_v61, %v790_v1 }
 0x671   :  { %v796_v9 = vadd.f32 %v795_v7, %v793_v8 }
 0x673   :  { %1812 = vmatmul.msk.f32.vlgmr.msra.gmra.mxu0 %vm45_vm0, %v796_v9 }
 0x68f   :  { %v765_v11 = vpop.xlane.xlu1 %764 }
 0x690   :  { %v767_v12 = vmul.f32 %v765_v11, %v2110_v10 }
 0x692   :  { %v769_v13 = vadd.f32 1e-06, %v767_v12 }
 0x694   :  { %1975 = vrsqrt.f32 %v769_v13  ;;  %vm786_vm15 = vweird.f32 %v769_v13 }
 0x69a   :  { %v1976_v14 = vpop.eup %1975 }
 0x69b   :  { %v781_v15 = vmul.f32 %v1976_v14, %v769_v13  ;;  %vm787_vm14 = vweird.f32 %v1976_v14 }
 0x69c   :  { %vm788_vm1 = vmor %vm786_vm15, %vm787_vm14 }
 0x69d   :  { %v782_v16 = vmul.f32 %v1976_v14, %v781_v15  ;;  %v870_v15 = vperm.slane %v2151_v38, 7 }
 0x69f   :  { %v783_v17 = vmul.f32 0.5, %v782_v16 }
 0x6a1   :  { %v784_v18 = vsub.f32 1.5, %v783_v17 }
 0x6a3   :  { %v785_v19 = vmul.f32 %v1976_v14, %v784_v18 }
 0x6a5   :  { %v789_v63 = vsel %vm788_vm1, %v1976_v14, %v785_v19 }
 0x6a6   :  { %v791_v5 = vmul.f32 %v789_v63, %v757_v44 }
 0x6a8   :  { %v794_v20 = vmul.f32 %v792_v61, %v791_v5 }
 0x6aa   :  { %v797_v27 = vadd.f32 %v795_v7, %v794_v20 }
 0x6ac   :  { %1813 = vmatmul.msk.f32.gmra.mxu0 %vm45_vm0, %v797_v27 }
 0x6f0   :  { %v822_v37 = vpop.f32.mrf.mxu0 }
 0x6f1   :  { %v823_v21 = vadd.f32 %v822_v37, %v798_v3 }
 0x6f3   :  { %v1814_v25 = vmul.f32 -1.702, %v823_v21 }
 0x6f5   :  { %v832_v23 = vmul.f32 1.442695, %v1814_v25 }
 0x6f7   :  { %1977 = vpow2.f32 %v832_v23  ;;  %v2449_v23 = vld [vmem:[%s2709_s3 + $0x8] sm:$0xff] }
 0x6fd   :  { %v1978_v0 = vpop.eup %1977 }
 0x6fe   :  { %v836_v24 = vadd.f32 1.0, %v1978_v0 }
 0x700   :  { %1979 = vrcp.f32 %v836_v24  ;;  %v849_v2 = vand.u32 2147483648, %v836_v24  ;;  %v847_v46 = vand.u32 2147483647, %v836_v24  ;;  %vm843_vm3 = vweird.f32 %v836_v24 }
 0x702   :  { %v850_v48 = vor.u32 1.1754944e-38, %v849_v2  ;;  %vm848_vm5 = vcmp.eq.f32.partialorder %v847_v46, 8.507059e+37  ;;  %v971_v2 = vperm.slane %v2449_v23, 1 }
 0x706   :  { %v1980_v26 = vpop.eup %1979 }
 0x707   :  { %v839_v43 = vmul.f32 %v1980_v26, %v836_v24  ;;  %vm844_vm2 = vweird.f32 %v1980_v26 }
 0x708   :  { %vm845_vm4 = vmor %vm843_vm3, %vm844_vm2 }
 0x709   :  { %v840_v44 = vsub.f32 1.0, %v839_v43 }
 0x70b   :  { %v841_v45 = vmul.f32 %v1980_v26, %v840_v44 }
 0x70d   :  { %v842_v47 = vadd.f32 %v1980_v26, %v841_v45 }
 0x70f   :  { %v846_v49 = vsel %vm845_vm4, %v1980_v26, %v842_v47  ;;  %v968_v26 = vperm.slane %v2449_v23, 0 }
 0x710   :  { %v851_v50 = vsel %vm848_vm5, %v850_v48, %v846_v49 }
 0x711   :  { %v868_v51 = vmul.f32 %v851_v50, %v823_v21 }
 0x713   :  { %887 = vmatmul.f32.vlgmr.msrb.gmra.mxu1 %v868_v51 }
 0x729   :  { %v825_v52 = vpop.f32.mrf.mxu0 }
 0x72a   :  { %v826_v53 = vadd.f32 %v825_v52, %v798_v3 }
 0x72c   :  { %v1815_v54 = vmul.f32 -1.702, %v826_v53 }
 0x72e   :  { %v834_v55 = vmul.f32 1.442695, %v1815_v54 }
 0x730   :  { %1981 = vpow2.f32 %v834_v55 }
 0x736   :  { %v1982_v56 = vpop.eup %1981 }
 0x737   :  { %v837_v57 = vadd.f32 1.0, %v1982_v56 }
 0x739   :  { %1983 = vrcp.f32 %v837_v57  ;;  %v864_v1 = vand.u32 2147483648, %v837_v57  ;;  %v862_v8 = vand.u32 2147483647, %v837_v57  ;;  %vm858_vm7 = vweird.f32 %v837_v57 }
 0x73b   :  { %v865_v11 = vor.u32 1.1754944e-38, %v864_v1  ;;  %vm863_vm12 = vcmp.eq.f32.partialorder %v862_v8, 8.507059e+37 }
 0x73f   :  { %v1984_v59 = vpop.eup %1983 }
 0x740   :  { %v854_v61 = vmul.f32 %v1984_v59, %v837_v57  ;;  %vm859_vm6 = vweird.f32 %v1984_v59 }
 0x741   :  { %vm860_vm11 = vmor %vm858_vm7, %vm859_vm6 }
 0x742   :  { %v855_v62 = vsub.f32 1.0, %v854_v61 }
 0x744   :  { %v856_v7 = vmul.f32 %v1984_v59, %v855_v62  ;;  %v974_v62 = vperm.slane %v2449_v23, 4 }
 0x746   :  { %v857_v9 = vadd.f32 %v1984_v59, %v856_v7 }
 0x748   :  { %v861_v12 = vsel %vm860_vm11, %v1984_v59, %v857_v9 }
 0x749   :  { %v866_v13 = vsel %vm863_vm12, %v865_v11, %v861_v12 }
 0x74a   :  { %v869_v14 = vmul.f32 %v866_v13, %v826_v53 }
 0x74c   :  { %890 = vmatmul.f32.gmra.mxu1 %v869_v14 }
 0x790   :  { %v888_v16 = vpop.f32.mrf.mxu1 }
 0x791   :  { %v889_v17 = vadd.f32 %v888_v16, %v870_v15 }
 0x793   :  { %v2402_v18 = vadd.f32 %v889_v17, %v2318_v4 }
 0x795   :  { %v924_v19 = vsel %vm45_vm0, %v2402_v18, 0.0 }
 0x796   :  { %925 = vadd.xlane.f32.xlu0 %v924_v19 }
 0x7c9   :  { %v891_v63 = vpop.f32.mrf.mxu1 }
 0x7ca   :  { %v892_v5 = vadd.f32 %v891_v63, %v870_v15 }
 0x7cc   :  { %v2407_v20 = vadd.f32 %v892_v5, %v2323_v42 }
 0x7ce   :  { %v927_v27 = vsel %vm45_vm0, %v2407_v20, 0.0 }
 0x7cf   :  { %928 = vadd.xlane.f32.xlu2 %v927_v27 }
 0x809   :  { %v926_v28 = vpop.xlane.xlu0 %925 }
 0x80a   :  { %v930_v38 = vmul.f32 %v926_v28, %v2110_v10 }
 0x80c   :  { %v932_v29 = vsub.f32 %v2402_v18, %v930_v38 }
 0x80e   :  { %v934_v4 = vmul.f32 %v932_v29, %v932_v29 }
 0x810   :  { %v936_v31 = vsel %vm45_vm0, %v934_v4, 0.0 }
 0x811   :  { %937 = vadd.xlane.f32.xlu1 %v936_v31 }
 0x842   :  { %v929_v32 = vpop.xlane.xlu2 %928 }
 0x843   :  { %v931_v33 = vmul.f32 %v929_v32, %v2110_v10 }
 0x845   :  { %v933_v34 = vsub.f32 %v2407_v20, %v931_v33 }
 0x847   :  { %v935_v42 = vmul.f32 %v933_v34, %v933_v34 }
 0x849   :  { %v939_v35 = vsel %vm45_vm0, %v935_v42, 0.0 }
 0x84a   :  { %940 = vadd.xlane.f32.xlu0 %v939_v35 }
 0x884   :  { %v938_v3 = vpop.xlane.xlu1 %937 }
 0x885   :  { %v942_v6 = vmul.f32 %v938_v3, %v2110_v10 }
 0x887   :  { %v944_v37 = vadd.f32 1e-06, %v942_v6 }
 0x889   :  { %1985 = vrsqrt.f32 %v944_v37  ;;  %vm952_vm14 = vweird.f32 %v944_v37 }
 0x88f   :  { %v1986_v41 = vpop.eup %1985 }
 0x890   :  { %v947_v21 = vmul.f32 %v1986_v41, %v944_v37  ;;  %vm953_vm13 = vweird.f32 %v1986_v41 }
 0x891   :  { %vm954_vm15 = vmor %vm952_vm14, %vm953_vm13 }
 0x892   :  { %v948_v22 = vmul.f32 %v1986_v41, %v947_v21 }
 0x894   :  { %v949_v25 = vmul.f32 0.5, %v948_v22 }
 0x896   :  { %v950_v0 = vsub.f32 1.5, %v949_v25 }
 0x898   :  { %v951_v24 = vmul.f32 %v1986_v41, %v950_v0 }
 0x89a   :  { %v955_v43 = vsel %vm954_vm15, %v1986_v41, %v951_v24 }
 0x89b   :  { %v966_v44 = vmul.f32 %v955_v43, %v932_v29 }
 0x89d   :  { %v969_v45 = vmul.f32 %v968_v26, %v966_v44 }
 0x89f   :  { %v972_v46 = vadd.f32 %v971_v2, %v969_v45 }
 0x8a1   :  { %1841 = vmatmul.msk.f32.vlgmr.msra.gmra.mxu2 %vm45_vm0, %v972_v46 }
 0x8bd   :  { %v941_v47 = vpop.xlane.xlu0 %940 }
 0x8be   :  { %v943_v48 = vmul.f32 %v941_v47, %v2110_v10 }
 0x8c0   :  { %v945_v49 = vadd.f32 1e-06, %v943_v48 }
 0x8c2   :  { %1987 = vrsqrt.f32 %v945_v49  ;;  %vm962_vm2 = vweird.f32 %v945_v49 }
 0x8c8   :  { %v1988_v50 = vpop.eup %1987 }
 0x8c9   :  { %v957_v51 = vmul.f32 %v1988_v50, %v945_v49  ;;  %vm963_vm1 = vweird.f32 %v1988_v50 }
 0x8ca   :  { %vm964_vm3 = vmor %vm962_vm2, %vm963_vm1 }
 0x8cb   :  { %v958_v52 = vmul.f32 %v1988_v50, %v957_v51 }
 0x8cd   :  { %v959_v53 = vmul.f32 0.5, %v958_v52 }
 0x8cf   :  { %v960_v54 = vsub.f32 1.5, %v959_v53 }
 0x8d1   :  { %v961_v55 = vmul.f32 %v1988_v50, %v960_v54 }
 0x8d3   :  { %v965_v56 = vsel %vm964_vm3, %v1988_v50, %v961_v55 }
 0x8d4   :  { %v967_v57 = vmul.f32 %v965_v56, %v933_v34 }
 0x8d6   :  { %v970_v59 = vmul.f32 %v968_v26, %v967_v57 }
 0x8d8   :  { %v973_v61 = vadd.f32 %v971_v2, %v970_v59 }
 0x8da   :  { %1842 = vmatmul.msk.f32.gmra.mxu2 %vm45_vm0, %v973_v61 }
 0x924   :  { %v998_v1 = vpop.f32.mrf.mxu2 }
 0x925   :  { %v2457_v7 = vadd.f32 %v998_v1, %v974_v62 }
 0x927   :  { %1025 = vrot.lane.b32.xlu0 %v2457_v7, %s2060_s28  ;;  %1021 = vrot.lane.b32.xlu1 %v2457_v7, %s2061_s29  ;;  %v1004_v11 = vmul.f32 0.35355338, %v2457_v7 }
 0x928   :  { %1023 = vrot.lane.b32.xlu2 %v2457_v7, %s2062_s30 }
 0x95d   :  { %v1001_v8 = vpop.f32.mrf.mxu2 }
 0x95e   :  { %v2465_v9 = vadd.f32 %v1001_v8, %v974_v62 }
 0x960   :  { %1030 = vrot.lane.b32.xlu0 %v2465_v9, %s2062_s30  ;;  %1032 = vrot.lane.b32.xlu1 %v2465_v9, %s2060_s28  ;;  %v1005_v19 = vmul.f32 0.35355338, %v2465_v9 }
 0x961   :  { %1028 = vrot.lane.b32.xlu2 %v2465_v9, %s2061_s29 }
 0x968   :  { %1011 = vrot.lane.b32.xlu0 %v1004_v11, %s2060_s28  ;;  %1009 = vrot.lane.b32.xlu1 %v1004_v11, %s2062_s30 }
 0x969   :  { %1034 = vrot.lane.b32.xlu2 %v2457_v7, %s2063_s5 }
 0x971   :  { %1007 = vrot.lane.b32.xlu2 %v1004_v11, %s2061_s29 }
 0x982   :  { %v2479_v12 = vpop.permute.xlu2 %1023 }
 0x983   :  { %1086 = vrot.lane.b32.xlu0 %v2479_v12, %s2063_s5 }
 0x999   :  { %v2483_v13 = vpop.permute.xlu0 %1025  ;;  %v2485_v14 = vpop.permute.xlu1 %1021 }
 0x99a   :  { %v1910_v15 = vpack.i.bf16 %v2479_v12, %v2485_v14  ;;  %1112 = vrot.lane.b32.xlu0 %v2483_v13, %s2063_s5  ;;  %1060 = vrot.lane.b32.xlu2 %v2485_v14, %s2063_s5 }
 0x9a2   :  { %1138 = vrot.lane.b32.xlu2 %v2465_v9, %s2063_s5 }
 0x9bb   :  { %v2495_v16 = vpop.permute.xlu2 %1028 }
 0x9bc   :  { %v1915_v17 = vpack.i.bf16 %v2495_v16, %v2483_v13  ;;  %1164 = vrot.lane.b32.xlu1 %v2495_v16, %s2063_s5 }
 0x9c3   :  { %v1035_v63 = vpop.permute.xlu2 %1034 }
 0x9c4   :  { %1843 = vmatpush.xpose.msk.msrb.mxu3 %vm165_vm8, %v1035_v63  ;;  %1014 = vrot.lane.b32.xlu1 %v1005_v19, %s2061_s29 }
 0x9c7   :  { %1844 = vmatmul.msk.f32.vlgmr.msrb.gmra.mxu3 %vm165_vm8, %v1004_v11 }
 0x9cb   :  { %v1008_v38 = vpop.permute.xlu2 %1007 }
 0x9cc   :  { %1016 = vrot.lane.b32.xlu1 %v1005_v19, %s2062_s30 }
 0x9d2   :  { %v2506_v5 = vpop.permute.xlu0 %1030  ;;  %v2508_v27 = vpop.permute.xlu1 %1032 }
 0x9d3   :  { %v1920_v28 = vpack.i.bf16 %v2508_v27, %v2506_v5  ;;  %1190 = vrot.lane.b32.xlu0 %v2506_v5, %s2063_s5  ;;  %1216 = vrot.lane.b32.xlu2 %v2508_v27, %s2063_s5 }
 0x9da   :  { %v1012_v29 = vpop.permute.xlu0 %1011  ;;  %v1010_v32 = vpop.permute.xlu1 %1009 }
 0x9db   :  { %1018 = vrot.lane.b32.xlu0 %v1005_v19, %s2060_s28 }
 0x9f4   :  { %v1061_v4 = vpop.permute.xlu2 %1060 }
 0x9f5   :  { %v1087_v31 = vpop.permute.xlu0 %1086  ;;  %1845 = vmatpush.xpose.msk.msrb.mxu0 %vm165_vm8, %v1061_v4 }
 0x9f6   :  { %1847 = vmatpush.xpose.msk.msrb.mxu2 %vm165_vm8, %v1087_v31 }
 0x9f8   :  { %1846 = vmatmul.msk.f32.vlgmr.msrb.gmra.mxu0 %vm165_vm8, %v1008_v38 }
 0x9f9   :  { %1848 = vmatmul.msk.f32.vlgmr.msrb.gmra.mxu2 %vm165_vm8, %v1010_v32 }
 0x9fc   :  { %v1139_v33 = vpop.permute.xlu2 %1138 }
 0x9fd   :  { %1851 = vmatpush.xpose.msk.msra.mxu0 %vm165_vm8, %v1139_v33 }
 0xa00   :  { %1852 = vmatmul.msk.f32.vlgmr.msra.gmra.mxu0 %vm165_vm8, %v1005_v19 }
 0xa0c   :  { %v1113_v34 = vpop.permute.xlu0 %1112 }
 0xa0d   :  { %1849 = vmatpush.xpose.msk.msra.mxu3 %vm165_vm8, %v1113_v34 }
 0xa10   :  { %1850 = vmatmul.msk.f32.vlgmr.msra.gmra.mxu3 %vm165_vm8, %v1012_v29 }
 0xa2d   :  { %v1217_v42 = vpop.permute.xlu2 %1216 }
 0xa2e   :  { %v1165_v35 = vpop.permute.xlu1 %1164  ;;  %1857 = vmatpush.xpose.msk.msrb.mxu0 %vm165_vm8, %v1217_v42 }
 0xa2f   :  { %1853 = vmatpush.xpose.msk.msra.mxu2 %vm165_vm8, %v1165_v35 }
 0xa36   :  { %v1015_v3 = vpop.permute.xlu1 %1014 }
 0xa37   :  { %1854 = vmatmul.msk.f32.vlgmr.msra.gmra.mxu2 %vm165_vm8, %v1015_v3 }
 0xa3e   :  { %v1017_v37 = vpop.permute.xlu1 %1016 }
 0xa45   :  { %v1191_v6 = vpop.permute.xlu0 %1190 }
 0xa46   :  { %1855 = vmatpush.xpose.msk.msrb.mxu3 %vm165_vm8, %v1191_v6 }
 0xa49   :  { %1856 = vmatmul.msk.f32.vlgmr.msrb.gmra.mxu3 %vm165_vm8, %v1017_v37 }
 0xa4a   :  { %v1057_v43 = vpop.f32.mrf.mxu3 }
 0xa4b   :  { %v1242_v47 = vsel %vm165_vm8, %v1057_v43, -inf }
 0xa4d   :  { %v1019_v41 = vpop.permute.xlu0 %1018 }
 0xa4e   :  { %1858 = vmatmul.msk.f32.vlgmr.msrb.gmra.mxu0 %vm165_vm8, %v1019_v41 }
 0xa75   :  { %v1083_v21 = vpop.f32.mrf.mxu0 }
 0xa76   :  { %v1245_v22 = vsel %vm165_vm8, %v1083_v21, -inf }
 0xa77   :  { %1246 = vmax.xlane.f32.xlu1 %v1245_v22 }
 0xa7c   :  { %v1109_v25 = vpop.f32.mrf.mxu2 }
 0xa7d   :  { %v1248_v0 = vsel %vm165_vm8, %v1109_v25, -inf  ;;  %v2533_v24 = vpop.f32.mrf.mxu0 }
 0xa7e   :  { %1249 = vmax.xlane.f32.xlu2 %v1248_v0  ;;  %v1254_v26 = vsel %vm165_vm8, %v2533_v24, -inf }
 0xa86   :  { %1255 = vmax.xlane.f32.xlu2 %v1254_v26 }
 0xa93   :  { %v1135_v44 = vpop.f32.mrf.mxu3 }
 0xa94   :  { %v1251_v2 = vsel %vm165_vm8, %v1135_v44, -inf }
 0xa95   :  { %1252 = vmax.xlane.f32.xlu0 %v1251_v2 }
 0xaba   :  { %v1187_v45 = vpop.f32.mrf.mxu2 }
 0xabb   :  { %v1257_v46 = vsel %vm165_vm8, %v1187_v45, -inf }
 0xabc   :  { %1258 = vmax.xlane.f32.xlu1 %v1257_v46 }
 0xac4   :  { %1243 = vmax.xlane.f32.xlu1 %v1242_v47 }
 0xacb   :  { %v1239_v48 = vpop.f32.mrf.mxu0 }
 0xacc   :  { %v1213_v49 = vpop.f32.mrf.mxu3  ;;  %v1263_v50 = vsel %vm165_vm8, %v1239_v48, -inf }
 0xacd   :  { %1264 = vmax.xlane.f32.xlu0 %v1263_v50  ;;  %v1260_v51 = vsel %vm165_vm8, %v1213_v49, -inf }
 0xace   :  { %1261 = vmax.xlane.f32.xlu2 %v1260_v51 }
 0xae6   :  { %1916 = vrot.lane.b32.xlu2 %v1915_v17, %s2064_s6 }
 0xaea   :  { %v1247_v52 = vpop.xlane.xlu1 %1246 }
 0xaeb   :  { %v1267_v53 = vsub.f32 %v1083_v21, %v1247_v52 }
 0xaed   :  { %v1276_v54 = vmul.f32 1.442695, %v1267_v53 }
 0xaef   :  { %1989 = vpow2.f32 %v1276_v54 }
 0xaf1   :  { %v1250_v55 = vpop.xlane.xlu2 %1249 }
 0xaf2   :  { %v1268_v56 = vsub.f32 %v1109_v25, %v1250_v55 }
 0xaf4   :  { %v1278_v57 = vmul.f32 1.442695, %v1268_v56 }
 0xaf5   :  { %v2546_v59 = vpop.eup %1989 }
 0xaf6   :  { %1991 = vpow2.f32 %v1278_v57  ;;  %v1293_v61 = vsel %vm165_vm8, %v2546_v59, 0.0 }
 0xaf7   :  { %1294 = vadd.xlane.f32.xlu0 %v1293_v61 }
 0xaf9   :  { %v1256_v29 = vpop.xlane.xlu2 %1255 }
 0xafc   :  { %v2550_v62 = vpop.eup %1991 }
 0xafd   :  { %v1296_v1 = vsel %vm165_vm8, %v2550_v62, 0.0 }
 0xafe   :  { %1297 = vadd.xlane.f32.xlu1 %v1296_v1 }
 0xb08   :  { %v1253_v8 = vpop.xlane.xlu0 %1252 }
 0xb09   :  { %v1269_v11 = vsub.f32 %v1135_v44, %v1253_v8  ;;  %v1270_v44 = vsub.f32 %v2533_v24, %v1256_v29 }
 0xb0b   :  { %v1280_v13 = vmul.f32 1.442695, %v1269_v11  ;;  %v1282_v40 = vmul.f32 1.442695, %v1270_v44 }
 0xb0d   :  { %1993 = vpow2.f32 %v1280_v13 }
 0xb13   :  { %v2554_v16 = vpop.eup %1993 }
 0xb14   :  { %v1299_v17 = vsel %vm165_vm8, %v2554_v16, 0.0 }
 0xb15   :  { %1300 = vadd.xlane.f32.xlu2 %v1299_v17 }
 0xb17   :  { %1911 = vrot.lane.b32.xlu1 %v1910_v15, %s2064_s6 }
 0xb2d   :  { %1330 = vrot.lane.b32.xlu2 %v2457_v7, %s2064_s6 }
 0xb2f   :  { %v1259_v19 = vpop.xlane.xlu1 %1258 }
 0xb30   :  { %v1271_v42 = vsub.f32 %v1187_v45, %v1259_v19 }
 0xb32   :  { %v1284_v12 = vmul.f32 1.442695, %v1271_v42 }
 0xb37   :  { %v1244_v63 = vpop.xlane.xlu1 %1243 }
 0xb38   :  { %v1266_v38 = vsub.f32 %v1057_v43, %v1244_v63 }
 0xb3a   :  { %v1274_v4 = vmul.f32 1.442695, %v1266_v38 }
 0xb3c   :  { %1995 = vpow2.f32 %v1274_v4 }
 0xb40   :  { %v1265_v31 = vpop.xlane.xlu0 %1264 }
 0xb41   :  { %v1273_v32 = vsub.f32 %v1239_v48, %v1265_v31  ;;  %v1262_v33 = vpop.xlane.xlu2 %1261 }
 0xb42   :  { %v1996_v34 = vpop.eup %1995  ;;  %v1272_v6 = vsub.f32 %v1213_v49, %v1262_v33 }
 0xb43   :  { %v1288_v35 = vmul.f32 1.442695, %v1273_v32  ;;  %v1290_v3 = vsel %vm165_vm8, %v1996_v34, 0.0 }
 0xb44   :  { %1291 = vadd.xlane.f32.xlu1 %v1290_v3  ;;  %v1286_v14 = vmul.f32 1.442695, %v1272_v6 }
 0xb45   :  { %1997 = vpow2.f32 %v1288_v35 }
 0xb46   :  { %1999 = vpow2.f32 %v1284_v12 }
 0xb47   :  { %2001 = vpow2.f32 %v1286_v14 }
 0xb49   :  { %v1917_v7 = vpop.permute.xlu2 %1916 }
 0xb4a   :  { %v1918_v15 = vunpack.i.l.bf16 %v1917_v7  ;;  %v1919_v30 = vunpack.i.h.bf16 %v1917_v7 }
 0xb4b   :  { %v2565_v37 = vpop.eup %1997 }
 0xb4c   :  { %1429 = vmatpush.msra.mxu1 %v1918_v15  ;;  %v1311_v41 = vsel %vm165_vm8, %v2565_v37, 0.0  ;;  %v2000_v21 = vpop.eup %1999 }
 0xb4d   :  { %1312 = vadd.xlane.f32.xlu0 %v1311_v41  ;;  %v2002_v22 = vpop.eup %2001  ;;  %v1305_v25 = vsel %vm165_vm8, %v2000_v21, 0.0 }
 0xb4e   :  { %v1308_v0 = vsel %vm165_vm8, %v2002_v22, 0.0 }
 0xb55   :  { %1306 = vadd.xlane.f32.xlu0 %v1305_v25 }
 0xb56   :  { %1309 = vadd.xlane.f32.xlu2 %v1308_v0 }
 0xb5d   :  { %1931 = vrot.lane.b32.xlu1 %v1930_v60, %s2065_s7 }
 0xb69   :  { %1921 = vrot.lane.b32.xlu0 %v1920_v28, %s2064_s6 }
 0xb6a   :  { %v1295_v26 = vpop.xlane.xlu0 %1294 }
 0xb6b   :  { %2003 = vrcp.f32 %v1295_v26 }
 0xb6e   :  { %1434 = vrot.lane.b32.xlu2 %v2465_v9, %s2064_s6 }
 0xb71   :  { %v1298_v43 = vpop.xlane.xlu1 %1297  ;;  %v2004_v58 = vpop.eup %2003 }
 0xb72   :  { %2005 = vrcp.f32 %v1298_v43  ;;  %v1323_v2 = vmul.f32 %v2004_v58, %v2546_v59 }
 0xb73   :  { %2007 = vpow2.f32 %v1282_v40  ;;  %v1568_v40 = vperm.slane %v2449_v23, 5 }
 0xb76   :  { %1926 = vrot.lane.b32.xlu2 %v1925_v39, %s2065_s7 }
 0xb78   :  { %v2006_v60 = vpop.eup %2005 }
 0xb79   :  { %v1324_v36 = vmul.f32 %v2006_v60, %v2550_v62  ;;  %v2008_v39 = vpop.eup %2007 }
 0xb7a   :  { %v1302_v47 = vsel %vm165_vm8, %v2008_v39, 0.0 }
 0xb88   :  { %v1301_v5 = vpop.xlane.xlu2 %1300 }
 0xb89   :  { %v1912_v27 = vpop.permute.xlu1 %1911  ;;  %2009 = vrcp.f32 %v1301_v5 }
 0xb8a   :  { %v1914_v28 = vunpack.i.h.bf16 %v1912_v27  ;;  %v1913_v9 = vunpack.i.l.bf16 %v1912_v27 }
 0xb8c   :  { %1377 = vmatpush.msra.mxu3 %v1913_v9  ;;  %1403 = vmatpush.msra.mxu0 %v1914_v28 }
 0xb8d   :  { %1860 = vmatmul.msk.f32.vlgmr.msra.gmra.mxu3 %vm165_vm8, %v1323_v2  ;;  %1861 = vmatmul.msk.f32.vlgmr.msra.gmra.mxu0 %vm165_vm8, %v1324_v36 }
 0xb8e   :  { %1481 = vmatpush.msrb.mxu3 %v1919_v30 }
 0xb8f   :  { %v2010_v24 = vpop.eup %2009 }
 0xb90   :  { %v1325_v45 = vmul.f32 %v2010_v24, %v2554_v16  ;;  %v1331_v46 = vpop.permute.xlu2 %1330 }
 0xb91   :  { %1351 = vmatpush.msrb.mxu2 %v1331_v46 }
 0xb92   :  { %1862 = vmatmul.msk.f32.vlgmr.msra.gmra.mxu1 %vm165_vm8, %v1325_v45 }
 0xb93   :  { %1303 = vadd.xlane.f32.xlu0 %v1302_v47 }
 0xbb7   :  { %v1292_v48 = vpop.xlane.xlu1 %1291 }
 0xbb8   :  { %2011 = vrcp.f32 %v1292_v48 }
 0xbbe   :  { %v2012_v49 = vpop.eup %2011 }
 0xbbf   :  { %v1322_v50 = vmul.f32 %v2012_v49, %v1996_v34 }
 0xbc0   :  { %v1313_v51 = vpop.xlane.xlu0 %1312 }
 0xbc1   :  { %1859 = vmatmul.msk.f32.vlgmr.msrb.gmra.mxu2 %vm165_vm8, %v1322_v50  ;;  %v1823_v50 = vld [vmem:[%s2707_s1 + $0x78] sm:$0xff] }
 0xbc2   :  { %1685 = vmatpush.msra.mxu3 %v1823_v50 }
 0xbc8   :  { %v1307_v52 = vpop.xlane.xlu0 %1306 }
 0xbc9   :  { %2013 = vrcp.f32 %v1307_v52  ;;  %v1310_v53 = vpop.xlane.xlu2 %1309  ;;  %v1819_v52 = vld [vmem:[%s2707_s1 + $0x58] sm:$0xff] }
 0xbca   :  { %2015 = vrcp.f32 %v1313_v51  ;;  %v1821_v51 = vld [vmem:[%s2707_s1 + $0x68] sm:$0xff] }
 0xbcb   :  { %2017 = vrcp.f32 %v1310_v53  ;;  %1686 = vmatpush.msra.mxu3 %v1821_v51  ;;  %v1817_v53 = vld [vmem:[%s2707_s1 + $0x48] sm:$0xff] }
 0xbcd   :  { %1687 = vmatpush.msra.mxu3 %v1819_v52 }
 0xbcf   :  { %v2014_v54 = vpop.eup %2013  ;;  %v1932_v32 = vpop.permute.xlu1 %1931  ;;  %1688 = vmatpush.msra.mxu3 %v1817_v53 }
 0xbd0   :  { %v1327_v55 = vmul.f32 %v2014_v54, %v2000_v21  ;;  %v2016_v57 = vpop.eup %2015  ;;  %v1934_v34 = vunpack.i.h.bf16 %v1932_v32  ;;  %v1933_v42 = vunpack.i.l.bf16 %v1932_v32 }
 0xbd1   :  { %v1435_v56 = vpop.permute.xlu2 %1434  ;;  %v2018_v59 = vpop.eup %2017  ;;  %v1329_v8 = vmul.f32 %v2016_v57, %v2565_v37 }
 0xbd2   :  { %1455 = vmatpush.msra.mxu2 %v1435_v56  ;;  %1864 = vmatmul.msk.f32.vlgmr.msrb.gmra.mxu3 %vm165_vm8, %v1327_v55  ;;  %v1328_v11 = vmul.f32 %v2018_v59, %v2002_v22 }
 0xbd9   :  { %v1927_v29 = vpop.permute.xlu2 %1926 }
 0xbda   :  { %v1929_v4 = vunpack.i.h.bf16 %v1927_v29  ;;  %v1928_v31 = vunpack.i.l.bf16 %v1927_v29 }
 0xbdb   :  { %v1922_v61 = vpop.permute.xlu0 %1921 }
 0xbdc   :  { %v1924_v62 = vunpack.i.h.bf16 %v1922_v61  ;;  %v1923_v1 = vunpack.i.l.bf16 %v1922_v61  ;;  %1603 = vmatpush.msrb.mxu2 %v1928_v31 }
 0xbde   :  { %1507 = vmatpush.msrb.mxu0 %v1923_v1  ;;  %1533 = vmatpush.msrb.mxu1 %v1924_v62 }
 0xbdf   :  { %1865 = vmatmul.msk.f32.vlgmr.msrb.gmra.mxu0 %vm165_vm8, %v1328_v11  ;;  %1866 = vmatmul.msk.f32.vlgmr.msrb.gmra.mxu1 %vm165_vm8, %v1329_v8  ;;  %v1660_v11 = vperm.slane %v2449_v23, 2 }
 0xbe0   :  { %1604 = vmatpush.msrb.mxu2 %v1929_v4 }
 0xbe2   :  { %1605 = vmatpush.msrb.mxu2 %v1933_v42 }
 0xbe4   :  { %1606 = vmatpush.msrb.mxu2 %v1934_v34 }
 0xc06   :  { %v1304_v13 = vpop.xlane.xlu0 %1303 }
 0xc07   :  { %2019 = vrcp.f32 %v1304_v13 }
 0xc0a   :  { %v1405_v63 = vpop.f32.mrf.mxu0 }
 0xc0d   :  { %v2020_v16 = vpop.eup %2019 }
 0xc0e   :  { %v1326_v17 = vmul.f32 %v2020_v16, %v2008_v39 }
 0xc0f   :  { %v1431_v38 = vpop.f32.mrf.mxu1 }
 0xc10   :  { %v1379_v19 = vpop.f32.mrf.mxu3  ;;  %1863 = vmatmul.msk.f32.vlgmr.msra.gmra.mxu2 %vm165_vm8, %v1326_v17  ;;  %v1663_v17 = vperm.slane %v2449_v23, 3 }
 0xc11   :  { %1539 = vrot.lane.b32.xlu2 %v1379_v19, %s2066_s8 }
 0xc19   :  { %1543 = vrot.lane.b32.xlu2 %v1405_v63, %s2068_s10 }
 0xc21   :  { %1547 = vrot.lane.b32.xlu2 %v1431_v38, %s2067_s9 }
 0xc44   :  { %v1353_v14 = vpop.f32.mrf.mxu2 }
 0xc55   :  { %v1483_v33 = vpop.f32.mrf.mxu3 }
 0xc56   :  { %1554 = vrot.lane.b32.xlu0 %v1483_v33, %s2066_s8 }
 0xc5c   :  { %v1509_v35 = vpop.f32.mrf.mxu0  ;;  %v1535_v3 = vpop.f32.mrf.mxu1 }
 0xc5d   :  { %1558 = vrot.lane.b32.xlu2 %v1509_v35, %s2068_s10 }
 0xc65   :  { %1562 = vrot.lane.b32.xlu2 %v1535_v3, %s2067_s9 }
 0xc6b   :  { %v1540_v6 = vpop.permute.xlu2 %1539 }
 0xc6c   :  { %v1550_v7 = vsel %vm165_vm8, %v1353_v14, %v1540_v6 }
 0xc73   :  { %v1544_v12 = vpop.permute.xlu2 %1543 }
 0xc74   :  { %v1551_v15 = vsel %vm681_vm9, %v1550_v7, %v1544_v12  ;;  %v1838_v7 = vld [vmem:[%s2708_s2 + $0xf0] sm:$0xff] }
 0xc7b   :  { %v1548_v37 = vpop.permute.xlu2 %1547 }
 0xc7c   :  { %v1552_v41 = vsel %vm683_vm10, %v1551_v15, %v1548_v37  ;;  %v1837_v15 = vld [vmem:[%s2708_s2 + $0xe8] sm:$0xff]  ;;  %v1836_v37 = vld [vmem:[%s2708_s2 + $0xe0] sm:$0xff] }
 0xc7d   :  { %1867 = vmatmul.msk.f32.vlgmr.msrb.gmra.mxu2 %vm45_vm0, %v1552_v41  ;;  %v1835_v41 = vld [vmem:[%s2708_s2 + $0xd8] sm:$0xff] }
 0xc93   :  { %v1457_v22 = vpop.f32.mrf.mxu2 }
 0xcb7   :  { %v1559_v21 = vpop.permute.xlu2 %1558 }
 0xcbf   :  { %v1563_v26 = vpop.permute.xlu2 %1562 }
 0xcc8   :  { %v1555_v25 = vpop.permute.xlu0 %1554 }
 0xcc9   :  { %v1565_v0 = vsel %vm165_vm8, %v1457_v22, %v1555_v25  ;;  %v1833_v22 = vld [vmem:[%s2708_s2 + $0xc8] sm:$0xff]  ;;  %v1832_v25 = vld [vmem:[%s2708_s2 + $0xc0] sm:$0xff] }
 0xcca   :  { %v1566_v43 = vsel %vm681_vm9, %v1565_v0, %v1559_v21  ;;  %v1834_v21 = vld [vmem:[%s2708_s2 + $0xd0] sm:$0xff]  ;;  %v1831_v0 = vld [vmem:[%s2708_s2 + $0xb8] sm:$0xff] }
 0xccb   :  { %v1567_v44 = vsel %vm683_vm10, %v1566_v43, %v1563_v26  ;;  %v1830_v26 = vld [vmem:[%s2708_s2 + $0xb0] sm:$0xff]  ;;  %v1829_v43 = vld [vmem:[%s2708_s2 + $0xa8] sm:$0xff] }
 0xccc   :  { %1868 = vmatmul.msk.f32.gmra.mxu2 %vm45_vm0, %v1567_v44  ;;  %v1828_v44 = vld [vmem:[%s2708_s2 + $0xa0] sm:$0xff] }
 0xd00   :  { %v1608_v58 = vpop.f32.mrf.mxu2 }
 0xd01   :  { %v1609_v60 = vadd.f32 %v1608_v58, %v1568_v40  ;;  %v1666_v58 = vperm.slane %v2449_v23, 6 }
 0xd03   :  { %v2615_v5 = vadd.f32 %v1609_v60, %v2402_v18  ;;  %v1826_v60 = vld [vmem:[%s2708_s2 + $0x90] sm:$0xff] }
 0xd05   :  { %v1616_v27 = vsel %vm45_vm0, %v2615_v5, 0.0 }
 0xd06   :  { %1617 = vadd.xlane.f32.xlu1 %v1616_v27 }
 0xd4f   :  { %v1611_v28 = vpop.f32.mrf.mxu2 }
 0xd50   :  { %v1612_v9 = vadd.f32 %v1611_v28, %v1568_v40  ;;  %v1827_v40 = vld [vmem:[%s2708_s2 + $0x98] sm:$0xff]  ;;  %v1825_v28 = vld [vmem:[%s2708_s2 + $0x88] sm:$0xff] }
 0xd52   :  { %v2620_v2 = vadd.f32 %v1612_v9, %v2407_v20 }
 0xd54   :  { %v1619_v36 = vsel %vm45_vm0, %v2620_v2, 0.0 }
 0xd55   :  { %1620 = vadd.xlane.f32.xlu0 %v1619_v36  ;;  %v1824_v36 = vld [vmem:[%s2708_s2 + $0x80] sm:$0xff] }
 0xd79   :  { %v1618_v30 = vpop.xlane.xlu1 %1617 }
 0xd7a   :  { %v1622_v39 = vmul.f32 %v1618_v30, %v2110_v10 }
 0xd7c   :  { %v1624_v24 = vsub.f32 %v2615_v5, %v1622_v39 }
 0xd7e   :  { %v1626_v18 = vmul.f32 %v1624_v24, %v1624_v24 }
 0xd80   :  { %v1628_v45 = vsel %vm45_vm0, %v1626_v18, 0.0 }
 0xd81   :  { %1629 = vadd.xlane.f32.xlu2 %v1628_v45 }
 0xdc8   :  { %v1621_v46 = vpop.xlane.xlu0 %1620 }
 0xdc9   :  { %v1623_v47 = vmul.f32 %v1621_v46, %v2110_v10 }
 0xdcb   :  { %v1625_v48 = vsub.f32 %v2620_v2, %v1623_v47 }
 0xdcd   :  { %v1627_v20 = vmul.f32 %v1625_v48, %v1625_v48 }
 0xdcf   :  { %v1631_v49 = vsel %vm45_vm0, %v1627_v20, 0.0 }
 0xdd0   :  { %1632 = vadd.xlane.f32.xlu1 %v1631_v49 }
 0xdf4   :  { %v1630_v54 = vpop.xlane.xlu2 %1629 }
 0xdf5   :  { %v1634_v55 = vmul.f32 %v1630_v54, %v2110_v10 }
 0xdf7   :  { %v1636_v56 = vadd.f32 1e-06, %v1634_v55 }
 0xdf9   :  { %2021 = vrsqrt.f32 %v1636_v56  ;;  %vm1644_vm9 = vweird.f32 %v1636_v56 }
 0xdff   :  { %v2022_v57 = vpop.eup %2021 }
 0xe00   :  { %v1639_v59 = vmul.f32 %v2022_v57, %v1636_v56  ;;  %vm1645_vm8 = vweird.f32 %v2022_v57 }
 0xe01   :  { %vm1646_vm10 = vmor %vm1644_vm9, %vm1645_vm8 }
 0xe02   :  { %v1640_v61 = vmul.f32 %v2022_v57, %v1639_v59 }
 0xe04   :  { %v1641_v62 = vmul.f32 0.5, %v1640_v61 }
 0xe06   :  { %v1642_v1 = vsub.f32 1.5, %v1641_v62 }
 0xe08   :  { %v1643_v8 = vmul.f32 %v2022_v57, %v1642_v1 }
 0xe0a   :  { %v1647_v13 = vsel %vm1646_vm10, %v2022_v57, %v1643_v8 }
 0xe0b   :  { %v1658_v16 = vmul.f32 %v1647_v13, %v1624_v24 }
 0xe0d   :  { %v1661_v19 = vmul.f32 %v1660_v11, %v1658_v16 }
 0xe0f   :  { %v1664_v63 = vadd.f32 %v1663_v17, %v1661_v19 }
 0xe11   :  { %1869 = vmatmul.msk.f32.vlgmr.msra.gmra.mxu3 %vm45_vm0, %v1664_v63 }
 0xe43   :  { %v1633_v38 = vpop.xlane.xlu1 %1632 }
 0xe44   :  { %v1635_v29 = vmul.f32 %v1633_v38, %v2110_v10  ;;  %v1839_v10 = vld [vmem:[%s2708_s2 + $0xf8] sm:$0xff] }
 0xe45   :  { %1739 = vmatpush.msra.mxu0 %v1839_v10 }
 0xe46   :  { %v1637_v4 = vadd.f32 1e-06, %v1635_v29 }
 0xe47   :  { %1740 = vmatpush.msra.mxu0 %v1838_v7 }
 0xe48   :  { %2023 = vrsqrt.f32 %v1637_v4  ;;  %vm1654_vm5 = vweird.f32 %v1637_v4 }
 0xe49   :  { %1741 = vmatpush.msra.mxu0 %v1837_v15 }
 0xe4b   :  { %1742 = vmatpush.msra.mxu0 %v1836_v37 }
 0xe4d   :  { %1743 = vmatpush.msra.mxu0 %v1835_v41 }
 0xe4e   :  { %v2024_v31 = vpop.eup %2023 }
 0xe4f   :  { %v1649_v32 = vmul.f32 %v2024_v31, %v1637_v4  ;;  %vm1655_vm4 = vweird.f32 %v2024_v31  ;;  %1744 = vmatpush.msra.mxu0 %v1834_v21 }
 0xe50   :  { %vm1656_vm6 = vmor %vm1654_vm5, %vm1655_vm4 }
 0xe51   :  { %v1650_v33 = vmul.f32 %v2024_v31, %v1649_v32  ;;  %1745 = vmatpush.msra.mxu0 %v1833_v22 }
 0xe53   :  { %v1651_v34 = vmul.f32 0.5, %v1650_v33  ;;  %1746 = vmatpush.msra.mxu0 %v1832_v25 }
 0xe55   :  { %v1652_v42 = vsub.f32 1.5, %v1651_v34  ;;  %1747 = vmatpush.msra.mxu0 %v1831_v0 }
 0xe57   :  { %v1653_v35 = vmul.f32 %v2024_v31, %v1652_v42  ;;  %1748 = vmatpush.msra.mxu0 %v1830_v26 }
 0xe59   :  { %v1657_v3 = vsel %vm1656_vm6, %v2024_v31, %v1653_v35  ;;  %1749 = vmatpush.msra.mxu0 %v1829_v43  ;;  %v1738_v31 = vperm.slane %v2449_v23, 7 }
 0xe5a   :  { %v1659_v6 = vmul.f32 %v1657_v3, %v1625_v48 }
 0xe5b   :  { %1750 = vmatpush.msra.mxu0 %v1828_v44 }
 0xe5c   :  { %v1662_v12 = vmul.f32 %v1660_v11, %v1659_v6 }
 0xe5d   :  { %1751 = vmatpush.msra.mxu0 %v1827_v40 }
 0xe5e   :  { %v1665_v14 = vadd.f32 %v1663_v17, %v1662_v12 }
 0xe5f   :  { %1752 = vmatpush.msra.mxu0 %v1826_v60 }
 0xe60   :  { %1870 = vmatmul.msk.f32.gmra.mxu3 %vm45_vm0, %v1665_v14 }
 0xe61   :  { %1753 = vmatpush.msra.mxu0 %v1825_v28 }
 0xe63   :  { %1754 = vmatpush.msra.mxu0 %v1824_v36 }
 0xe94   :  { %v1690_v27 = vpop.f32.mrf.mxu3 }
 0xe95   :  { %v1691_v9 = vadd.f32 %v1690_v27, %v1666_v58 }
 0xe97   :  { %v1871_v30 = vmul.f32 -1.702, %v1691_v9 }
 0xe99   :  { %v1700_v39 = vmul.f32 1.442695, %v1871_v30 }
 0xe9b   :  { %2025 = vpow2.f32 %v1700_v39 }
 0xea1   :  { %v2026_v24 = vpop.eup %2025 }
 0xea2   :  { %v1704_v18 = vadd.f32 1.0, %v2026_v24 }
 0xea4   :  { %2027 = vrcp.f32 %v1704_v18  ;;  %v1717_v48 = vand.u32 2147483648, %v1704_v18  ;;  %v1715_v49 = vand.u32 2147483647, %v1704_v18  ;;  %vm1711_vm11 = vweird.f32 %v1704_v18 }
 0xea6   :  { %v1718_v51 = vor.u32 1.1754944e-38, %v1717_v48  ;;  %vm1716_vm13 = vcmp.eq.f32.partialorder %v1715_v49, 8.507059e+37 }
 0xeaa   :  { %v2028_v45 = vpop.eup %2027 }
 0xeab   :  { %v1707_v46 = vmul.f32 %v2028_v45, %v1704_v18  ;;  %vm1712_vm7 = vweird.f32 %v2028_v45 }
 0xeac   :  { %vm1713_vm12 = vmor %vm1711_vm11, %vm1712_vm7 }
 0xead   :  { %v1708_v47 = vsub.f32 1.0, %v1707_v46 }
 0xeaf   :  { %v1709_v20 = vmul.f32 %v2028_v45, %v1708_v47 }
 0xeb1   :  { %v1710_v50 = vadd.f32 %v2028_v45, %v1709_v20 }
 0xeb3   :  { %v1714_v52 = vsel %vm1713_vm12, %v2028_v45, %v1710_v50 }
 0xeb4   :  { %v1719_v53 = vsel %vm1716_vm13, %v1718_v51, %v1714_v52 }
 0xeb5   :  { %v1736_v54 = vmul.f32 %v1719_v53, %v1691_v9 }
 0xeb7   :  { %1755 = vmatmul.f32.vlgmr.msra.gmra.mxu0 %v1736_v54 }
 0xee3   :  { %v1693_v55 = vpop.f32.mrf.mxu3 }
 0xee4   :  { %v1694_v56 = vadd.f32 %v1693_v55, %v1666_v58 }
 0xee6   :  { %v1872_v57 = vmul.f32 -1.702, %v1694_v56 }
 0xee8   :  { %v1702_v59 = vmul.f32 1.442695, %v1872_v57 }
 0xeea   :  { %2029 = vpow2.f32 %v1702_v59 }
 0xef0   :  { %v2030_v61 = vpop.eup %2029 }
 0xef1   :  { %v1705_v62 = vadd.f32 1.0, %v2030_v61 }
 0xef3   :  { %2031 = vrcp.f32 %v1705_v62  ;;  %v1732_v13 = vand.u32 2147483648, %v1705_v62  ;;  %v1730_v17 = vand.u32 2147483647, %v1705_v62  ;;  %vm1726_vm15 = vweird.f32 %v1705_v62 }
 0xef5   :  { %v1733_v63 = vor.u32 1.1754944e-38, %v1732_v13  ;;  %vm1731_vm2 = vcmp.eq.f32.partialorder %v1730_v17, 8.507059e+37 }
 0xef9   :  { %v2032_v1 = vpop.eup %2031 }
 0xefa   :  { %v1722_v8 = vmul.f32 %v2032_v1, %v1705_v62  ;;  %vm1727_vm14 = vweird.f32 %v2032_v1 }
 0xefb   :  { %vm1728_vm1 = vmor %vm1726_vm15, %vm1727_vm14 }
 0xefc   :  { %v1723_v11 = vsub.f32 1.0, %v1722_v8 }
 0xefe   :  { %v1724_v16 = vmul.f32 %v2032_v1, %v1723_v11 }
 0xf00   :  { %v1725_v19 = vadd.f32 %v2032_v1, %v1724_v16 }
 0xf02   :  { %v1729_v38 = vsel %vm1728_vm1, %v2032_v1, %v1725_v19 }
 0xf03   :  { %v1734_v29 = vsel %vm1731_vm2, %v1733_v63, %v1729_v38 }
 0xf04   :  { %v1737_v4 = vmul.f32 %v1734_v29, %v1694_v56 }
 0xf06   :  { %1758 = vmatmul.f32.gmra.mxu0 %v1737_v4 }
 0xf34   :  { %v1756_v32 = vpop.f32.mrf.mxu0 }
 0xf35   :  { %v1757_v33 = vadd.f32 %v1756_v32, %v1738_v31 }
 0xf37   :  { %v1762_v34 = vadd.f32 %v1757_v33, %v2615_v5 }
 0xf39   :  { %1764 = vst.msk [vmem:[#allocation2] sm:$0xff] %vm45_vm0, %v1762_v34 }
 0xf83   :  { %v1759_v42 = vpop.f32.mrf.mxu0 }
 0xf84   :  { %v1760_v35 = vadd.f32 %v1759_v42, %v1738_v31 }
 0xf86   :  { %v1763_v3 = vadd.f32 %v1760_v35, %v2620_v2 }
 0xf88   :  { %1765 = vst.msk [vmem:[#allocation2 + $0x8] sm:$0xff] %vm45_vm0, %v1763_v3 }
 0xf89   :  { %1778 = dma.vmem_to_hbm [thread:$0]  %s1771_s12, 256, %s1773_s27, [#allocation3], %s2070_s13, %s2070_s13, %s2066_s8  }
 0xf8a   :  { %2057 = dma.done.wait [#allocation3], 256  }
 0xf8b   :  { %2058 = vsyncadd [#allocation3], 4294967040 }
 0xf8c   :  { %1783 = vsyncpa [#allocation3], 1 }

</bundles_post_ra>
